<compile_context>
chip_gen: v6e
topology: v6e:2x2x1
jax: 0.10.0
libtpu: 0.0.40
codegen_flags: <defaults>
</compile_context>

<pallas_src>
import jax
import jax.numpy as jnp
import numpy as np
from jax.experimental import pallas as pl
from jax.experimental.pallas import tpu as pltpu

DIM_IN = 768        # transformer embed dim
DIM_FASTER = 1024   # cfg.FASTER.TRANS == True
DIM_FINAL = 2048
BN_EPS = 1e-5
NEG_PAD = -1e30     # bias for padded class lanes -> exp() == 0 in softmax


def _round_up(x, m):
    return ((x + m - 1) // m) * m


# ---------------------------------------------------------------------------
# Kernel 1:  x_top = ((inputs.mean(1)) @ W_trans^T) @ W_proj_top      (B, C_pad)
# The top half of the final projection is pre-applied here so the per-box
# kernel only needs a (B, C_pad) table for its gather.
# ---------------------------------------------------------------------------
def _mean_project_kernel(inp_ref, wt_ref, wpt_ref, out_ref):
    x = jnp.mean(inp_ref[...], axis=1)                                  # (B, 768) f32
    xp = jnp.dot(x.astype(jnp.bfloat16), wt_ref[...],
                 preferred_element_type=jnp.float32)                    # (B, 1024)
    out_ref[...] = jnp.dot(xp.astype(jnp.bfloat16), wpt_ref[...],
                           preferred_element_type=jnp.float32)          # (B, C_pad)


# ---------------------------------------------------------------------------
# Kernel 2: per-box fused head
#   gather(x_top) + mlp(Linear 256->1024 with BN folded) @ W_proj_bot + bias
#   + softmax, all on a 128-row tile of boxes with a 128-lane-dense output.
# ---------------------------------------------------------------------------
def _roi_head_kernel(bidx_ref, feat_ref, xtop_ref, wmlp_ref, wpb_ref,
                     bproj_ref, out_ref):
    bidx = bidx_ref[...]                                # (TB, 1) int32
    x_top = xtop_ref[...]                               # (B, C_pad) f32

    # intended gather: top_proj[j] = x_top[bboxes[j, 0]]  (B is tiny & static,
    # so an unrolled integer-compare select is cheaper than an MXU one-hot matmul)
    gathered = jnp.zeros((bidx.shape[0], x_top.shape[1]), jnp.float32)
    for b in range(x_top.shape[0]):
        gathered = jnp.where(bidx == b, x_top[b][None, :], gathered)

    # mlp: Linear(256, 1024, bias=False) with eval-mode BN folded into the weight
    feat = jnp.dot(feat_ref[...], wmlp_ref[...],
                   preferred_element_type=jnp.float32)                  # (TB, 1024)

    # projection(cat([x_boxes, feat])) == gathered (already @ W_top) + feat @ W_bot + bias
    # (bias already contains b_proj + bn_shift @ W_bot; padded lanes hold -1e30)
    logits = (gathered
              + jnp.dot(feat.astype(jnp.bfloat16), wpb_ref[...],
                        preferred_element_type=jnp.float32)
              + bproj_ref[...])                                         # (TB, C_pad)

    # act = Softmax(dim=1)  (inference path); reciprocal on the EUP slot
    m = jnp.max(logits, axis=1, keepdims=True)
    e = jnp.exp(logits - m)
    out_ref[...] = e * pl.reciprocal(jnp.sum(e, axis=1, keepdims=True), approx=True)


# ---------------------------------------------------------------------------
# Wrapper / glue
# ---------------------------------------------------------------------------
def transformer_roi_head_forward(inputs, bboxes, features, prep, *, box_tile=128):
    B = inputs.shape[0]
    Nb = bboxes.shape[0]
    C = prep["num_classes"]
    C_pad = prep["b_proj_pad"].shape[-1]

    # kernel 1: whole-array call (B is tiny), full refs in VMEM
    x_top = pl.pallas_call(
        _mean_project_kernel,
        out_shape=jax.ShapeDtypeStruct((B, C_pad), jnp.float32),
    )(inputs, prep["w_trans_t"], prep["w_proj_top_pad"])

    # glue: drop detector-feature col 0, take only the batch-index column of bboxes
    feats = features[:, 1:].astype(jnp.bfloat16)            # (Nb, 256)
    bidx = bboxes[:, 0:1].astype(jnp.int32)                  # (Nb, 1)

    # pad the box dimension to a multiple of box_tile (padded rows are discarded)
    Nb_pad = _round_up(Nb, box_tile)
    if Nb_pad != Nb:
        feats = jnp.pad(feats, ((0, Nb_pad - Nb), (0, 0)))
        bidx = jnp.pad(bidx, ((0, Nb_pad - Nb), (0, 0)))

    out_pad = pl.pallas_call(
        _roi_head_kernel,
        out_shape=jax.ShapeDtypeStruct((Nb_pad, C_pad), jnp.float32),
        grid_spec=pltpu.PrefetchScalarGridSpec(
            num_scalar_prefetch=0,
            grid=(Nb_pad // box_tile,),
            in_specs=[
                pl.BlockSpec((box_tile, 1), lambda i: (i, 0)),            # batch idx
                pl.BlockSpec((box_tile, 256), lambda i: (i, 0)),          # features
                pl.BlockSpec((B, C_pad), lambda i: (0, 0)),               # x_top table
                pl.BlockSpec((256, DIM_FASTER), lambda i: (0, 0)),        # W_mlp (BN-folded)
                pl.BlockSpec((DIM_FASTER, C_pad), lambda i: (0, 0)),      # W_proj bottom
                pl.BlockSpec((1, C_pad), lambda i: (0, 0)),               # folded bias
            ],
            out_specs=pl.BlockSpec((box_tile, C_pad), lambda i: (i, 0)),
        ),
        compiler_params=pltpu.CompilerParams(
            dimension_semantics=("parallel",)),
    )(bidx, feats, x_top, prep["w_mlp_folded"], prep["w_proj_bot_pad"],
      prep["b_proj_pad"])

    return out_pad[:Nb, :C], prep["multi_faster"]


# ---------------------------------------------------------------------------
# Parameters
# ---------------------------------------------------------------------------
def init_params(key, num_classes):
    """Raw (PyTorch-layout, f32) parameters."""
    k1, k2, k3, k4 = jax.random.split(key, 4)
    w_trans = jax.random.normal(k1, (DIM_FASTER, DIM_IN), jnp.float32) * 0.02   # (out, in)
    w_mlp = jax.random.normal(k2, (DIM_FASTER, 256), jnp.float32) * 0.02
    w_proj = jax.random.normal(k3, (num_classes, DIM_FINAL), jnp.float32) * 0.02
    b_proj = jax.random.normal(k4, (num_classes,), jnp.float32) * 0.02
    # BatchNorm1d(1024) default init / running stats
    return dict(
        w_trans=w_trans, w_mlp=w_mlp, w_proj=w_proj, b_proj=b_proj,
        bn_gamma=jnp.ones((DIM_FASTER,), jnp.float32),
        bn_beta=jnp.zeros((DIM_FASTER,), jnp.float32),
        bn_mean=jnp.zeros((DIM_FASTER,), jnp.float32),
        bn_var=jnp.ones((DIM_FASTER,), jnp.float32),
        multi_faster=jnp.array([0.0], jnp.float32),     # nn.Parameter([0.0])
    )


def prepare_params(raw, num_classes):
    """Fold eval-mode BN into weights/bias, split & lane-pad the projection, cast bf16."""
    C = num_classes
    C_pad = _round_up(C, 128)

    bn_scale = raw["bn_gamma"] / jnp.sqrt(raw["bn_var"] + BN_EPS)       # (1024,)
    bn_shift = raw["bn_beta"] - raw["bn_mean"] * bn_scale               # (1024,)

    # mlp weight with BN scale folded column-wise:  feat @ (W_mlp^T * scale)
    w_mlp_folded = (raw["w_mlp"].T * bn_scale[None, :]).astype(jnp.bfloat16)  # (256,1024)

    # split projection weight (stored (C, 2048)) into top / bottom halves
    w_proj_t = raw["w_proj"].T                                          # (2048, C)
    w_top = w_proj_t[:DIM_FASTER]                                       # (1024, C)
    w_bot = w_proj_t[DIM_FASTER:]                                       # (1024, C)

    # fold BN shift into the projection bias:  bias + bn_shift @ W_bot
    b_fold = raw["b_proj"] + bn_shift @ w_bot                           # (C,)

    # lane-pad the class dimension; padded bias lanes get -1e30 -> softmax-exact
    w_top_pad = jnp.zeros((DIM_FASTER, C_pad), jnp.float32).at[:, :C].set(w_top)
    w_bot_pad = jnp.zeros((DIM_FASTER, C_pad), jnp.float32).at[:, :C].set(w_bot)
    b_pad = jnp.full((1, C_pad), NEG_PAD, jnp.float32).at[0, :C].set(b_fold)

    return dict(
        num_classes=C,
        w_trans_t=raw["w_trans"].T.astype(jnp.bfloat16),                # (768, 1024)
        w_proj_top_pad=w_top_pad.astype(jnp.bfloat16),                  # (1024, C_pad)
        w_proj_bot_pad=w_bot_pad.astype(jnp.bfloat16),                  # (1024, C_pad)
        w_mlp_folded=w_mlp_folded,                                      # (256, 1024)
        b_proj_pad=b_pad,                                               # (1, C_pad) f32
        multi_faster=raw["multi_faster"],
    )


# ---------------------------------------------------------------------------
# Pure-JAX reference (f32, unfolded params)
# ---------------------------------------------------------------------------
def reference_forward(inputs, bboxes, features, raw):
    x = inputs.mean(axis=1) @ raw["w_trans"].T
    x_boxes = x[bboxes[:, 0].astype(jnp.int32)]
    bn_scale = raw["bn_gamma"] / jnp.sqrt(raw["bn_var"] + BN_EPS)
    bn_shift = raw["bn_beta"] - raw["bn_mean"] * bn_scale
    f = features[:, 1:] @ raw["w_mlp"].T
    f = f * bn_scale[None, :] + bn_shift[None, :]
    cat = jnp.concatenate([x_boxes, f], axis=1)
    logits = cat @ raw["w_proj"].T + raw["b_proj"][None, :]
    return jax.nn.softmax(logits, axis=1)


if __name__ == "__main__":
    key = jax.random.PRNGKey(0)
    kp, ki, kf, kb1, kb2 = jax.random.split(key, 5)

    B, T, Nb, num_classes = 2, 8, 200, 16
    raw = init_params(kp, num_classes)
    prep = prepare_params(raw, num_classes)

    inputs = jax.random.normal(ki, (B, T, DIM_IN), jnp.float32)
    features = jax.random.normal(kf, (Nb, 257), jnp.float32)
    box_batch = (jax.random.uniform(kb1, (Nb,)) * B).astype(jnp.int32).astype(jnp.float32)
    box_coords = jax.random.uniform(kb2, (Nb, 4), jnp.float32) * 16.0
    bboxes = jnp.concatenate([box_batch[:, None], box_coords], axis=1)

    out, multi_faster = transformer_roi_head_forward(inputs, bboxes, features, prep)
    out = jax.block_until_ready(out)
    multi_faster = jax.block_until_ready(multi_faster)

    ref = reference_forward(inputs, bboxes, features, raw)
    np.testing.assert_allclose(np.asarray(out), np.asarray(ref), rtol=2e-2, atol=2e-3)
    assert out.shape == (Nb, num_classes)
    assert multi_faster.shape == (1,)

    # TODO(synk): training-mode dropout / BatchNorm batch-statistics path is not
    # implemented (eval-mode BN is folded into the weights).
    print("KERNEL_OK")
</pallas_src>

<mosaic_0001>
module attributes {stable_mosaic.version = 11 : i64} {
  func.func @_mean_project_kernel(%arg0: memref<2x8x768xf32, #tpu.memory_space<vmem>>, %arg1: memref<768x1024xbf16, #tpu.memory_space<vmem>>, %arg2: memref<1024x128xbf16, #tpu.memory_space<vmem>>, %arg3: memref<2x128xf32, #tpu.memory_space<vmem>>) attributes {dimension_semantics = [], scalar_prefetch = 0 : i64, scratch_operands = 0 : i64, tpu.core_type = #tpu.core_type<tc>} {
    %c0 = arith.constant 0 : index
    %c0_0 = arith.constant 0 : index
    %c0_1 = arith.constant 0 : index
    %0 = vector.load %arg0[%c0, %c0_0, %c0_1] : memref<2x8x768xf32, #tpu.memory_space<vmem>>, vector<2x8x768xf32>
    %cst = arith.constant dense<0.000000e+00> : vector<2x768xf32>
    %1 = vector.multi_reduction <add>, %0, %cst [1] : vector<2x8x768xf32> to vector<2x768xf32>
    %cst_2 = arith.constant 8.000000e+00 : f32
    %2 = vector.broadcast %cst_2 : f32 to vector<2x768xf32>
    %3 = arith.divf %1, %2 : vector<2x768xf32>
    %4 = arith.truncf %3 : vector<2x768xf32> to vector<2x768xbf16>
    %c0_3 = arith.constant 0 : index
    %c0_4 = arith.constant 0 : index
    %5 = vector.load %arg1[%c0_3, %c0_4] : memref<768x1024xbf16, #tpu.memory_space<vmem>>, vector<768x1024xbf16>
    %cst_5 = arith.constant dense<0.000000e+00> : vector<2x1024xf32>
    %6 = tpu.matmul %4, %5, %cst_5 {dimension_numbers = #tpu.dot_dimension_numbers<[1], [0], [0], [1], [0, 0, 1, 1], [], []>} : vector<2x768xbf16>, vector<768x1024xbf16>, vector<2x1024xf32> -> vector<2x1024xf32>
    %7 = arith.truncf %6 : vector<2x1024xf32> to vector<2x1024xbf16>
    %c0_6 = arith.constant 0 : index
    %c0_7 = arith.constant 0 : index
    %8 = vector.load %arg2[%c0_6, %c0_7] : memref<1024x128xbf16, #tpu.memory_space<vmem>>, vector<1024x128xbf16>
    %cst_8 = arith.constant dense<0.000000e+00> : vector<2x128xf32>
    %9 = tpu.matmul %7, %8, %cst_8 {dimension_numbers = #tpu.dot_dimension_numbers<[1], [0], [0], [1], [0, 0, 1, 1], [], []>} : vector<2x1024xbf16>, vector<1024x128xbf16>, vector<2x128xf32> -> vector<2x128xf32>
    %c0_9 = arith.constant 0 : index
    %c0_10 = arith.constant 0 : index
    %10 = vector.load %arg3[%c0_9, %c0_10] : memref<2x128xf32, #tpu.memory_space<vmem>>, vector<2x128xf32>
    tpu.vector_store %arg3[%c0_9, %c0_10], %9 {strides = array<i32>} : memref<2x128xf32, #tpu.memory_space<vmem>>, vector<2x128xf32>,
    return
  }
}

</mosaic_0001>

<bundles_post_ra>
// kernel: tpu_custom_call.1
= control target key start
LH: loop header
LB: loop body
LE: loop exit
PB: predicated region body
PF: predicated region fallthrough
CT: control target
= control target key end

     0   :  { %8 = vsyncpa [#allocation3], 0  ;;  %s4552_s0 = inlined_call_operand.hbm [shape: f32[2,8,768], index: 0, kind: input, shape index: {}]   ;;  %s4553_s1 = inlined_call_operand.hbm [shape: bf16[768,1024], index: 1, kind: input, shape index: {}]   ;;  %s4554_s2 = inlined_call_operand.hbm [shape: bf16[1024,128], index: 2, kind: input, shape index: {}]   ;;  %s4555_s3 = inlined_call_operand.hbm [shape: f32[2,128], index: 3, kind: output, shape index: {}]  }
   0x1   :  { %9 = vsyncpa [#allocation6], 0 }
   0x2   :  { %10 = vsyncpa [#allocation4], 0  ;;  %s4398_s12 = smov [#allocation5]  }
   0x3   :  { %s28_s13 = sshll.u32 %s4398_s12, 4  ;;  %s29_s13 = int_to_ptr.vmem [resolvable:$true] %s28_s13 }
   0x4   :  { %s4320_s14 = scalar_lea.vmem %s29_s13, 49152  ;;  %p4325_p1 = scmp.lt.s32.totalorder %s29_s13, %s29_s13 }
   0x5   :  { %p4321_p0 = scmp.ne.s32.totalorder %s29_s13, %s4320_s14  ;;  %p4326_p2 = scmp.lt.s32.totalorder %s4320_s14, %s4320_s14 }
   0x7   :  { %p4327_p3 = por %p4326_p2, %p4325_p1 }
   0x9   :  { %p4328_p4 = pnand %p4327_p3, %p4321_p0 }
   0xb   :  { %4331 = shalt.err (!%p4328_p4)
}
   0xc   :  { %s4399_s15 = smov 512   ;;  %s4400_s16 = smov 32  }
   0xd   :  { %34 = dma.hbm_to_vmem [thread:$0]  %s4553_s1, 49152, %s29_s13, [#allocation6], %s4399_s15, %s4399_s15, %s4400_s16  }
   0xe   :  { %s4401_s19 = smov [#allocation2]  }
   0xf   :  { %s16_s20 = sshll.u32 %s4401_s19, 4  ;;  %s17_s20 = int_to_ptr.vmem [resolvable:$true] %s16_s20 }
  0x10   :  { %s4340_s21 = scalar_lea.vmem %s17_s20, 1536  ;;  %p4345_p6 = scmp.lt.s32.totalorder %s17_s20, %s17_s20 }
  0x11   :  { %p4341_p5 = scmp.ne.s32.totalorder %s17_s20, %s4340_s21  ;;  %p4346_p7 = scmp.lt.s32.totalorder %s4340_s21, %s4340_s21 }
  0x13   :  { %p4347_p8 = por %p4346_p7, %p4345_p6 }
  0x15   :  { %p4348_p9 = pnand %p4347_p8, %p4341_p5 }
  0x17   :  { %4351 = shalt.err (!%p4348_p9)
}
  0x18   :  { %s4402_s22 = smov 768   ;;  %s4403_s23 = smov 48  }
  0x19   :  { %22 = dma.hbm_to_vmem [thread:$0]  %s4552_s0, 1536, %s17_s20, [#allocation3], %s4402_s22, %s4402_s22, %s4403_s23  }
  0x1a   :  { %s4404_s26 = smov [#allocation7]  }
  0x1b   :  { %s40_s27 = sshll.u32 %s4404_s26, 4  ;;  %s41_s27 = int_to_ptr.vmem [resolvable:$true] %s40_s27 }
  0x1c   :  { %s4360_s1 = scalar_lea.vmem %s41_s27, 8192  ;;  %p4365_p11 = scmp.lt.s32.totalorder %s41_s27, %s41_s27 }
  0x1d   :  { %p4361_p10 = scmp.ne.s32.totalorder %s41_s27, %s4360_s1  ;;  %p4366_p12 = scmp.lt.s32.totalorder %s4360_s1, %s4360_s1 }
  0x1f   :  { %p4367_p13 = por %p4366_p12, %p4365_p11 }
  0x21   :  { %p4368_p0 = pnand %p4367_p13, %p4361_p10 }
  0x23   :  { %4371 = shalt.err (!%p4368_p0)
}
  0x24   :  { %s4405_s28 = smov 64   ;;  %s4406_s29 = smov 4  }
  0x25   :  { %46 = dma.hbm_to_vmem [thread:$0]  %s4554_s2, 8192, %s41_s27, [#allocation6], %s4405_s28, %s4405_s28, %s4406_s29  }
  0x26   :  { %4392 = dma.done.wait [#allocation3], 1536  }
  0x27   :  { %4393 = vsyncadd [#allocation3], 4294965760 }
  0x28   :  { %4394 = dma.done.wait [#allocation6], 57344  }
  0x29   :  { %4395 = vsyncadd [#allocation6], 4294909952  ;;  %v222_v0 = vld [vmem:[#allocation5 + $0x1c0] sm:$0xff]  ;;  %v58_v61 = vld [vmem:[#allocation2 + $0x8] sm:$0xff]  ;;  %vm574_vm0 = vcmask 1041409   ;;  %s4407_s0 = smov [#allocation8]  }
  0x2a   :  { %v226_v1 = vld [vmem:[#allocation5 + $0x1e0] sm:$0xff]  ;;  %v64_v62 = vld [vmem:[#allocation2 + $0x38] sm:$0xff]  ;;  %s3692_s2 = sshll.u32 %s4407_s0, 4  ;;  %s3693_s2 = int_to_ptr.vmem [resolvable:$true] %s3692_s2 }
  0x2b   :  { %v350_v2 = vld [vmem:[#allocation5 + $0x5c0] sm:$0xff]  ;;  %v3759_v3 = vcombine.high %v222_v0, %v226_v1  ;;  %v3758_v5 = vcombine.low %v222_v0, %v226_v1  ;;  %v75_v1 = vrot.slane %v58_v61, 4  ;;  %s4372_s5 = scalar_lea.vmem %s3693_s2, 32  ;;  %p4377_p2 = scmp.lt.s32.totalorder %s3693_s2, %s3693_s2 }
  0x2c   :  { %v354_v4 = vld [vmem:[#allocation5 + $0x5e0] sm:$0xff]  ;;  %p4373_p1 = scmp.ne.s32.totalorder %s3693_s2, %s4372_s5  ;;  %p4378_p3 = scmp.lt.s32.totalorder %s4372_s5, %s4372_s5 }
  0x2d   :  { %v214_v6 = vld [vmem:[#allocation5 + $0x180] sm:$0xff]  ;;  %v3887_v8 = vcombine.high %v350_v2, %v354_v4  ;;  %v3886_v9 = vcombine.low %v350_v2, %v354_v4  ;;  %2513 = vmatprep.subr.bf16.mxu0 %v3759_v3  ;;  %v111_v2 = vrot.slane %v64_v62, 4  ;;  %v60_v3 = vld [vmem:[#allocation2 + $0x18] sm:$0xff]  ;;  %v66_v4 = vld [vmem:[#allocation2 + $0x48] sm:$0xff] }
  0x2e   :  { %v218_v7 = vld [vmem:[#allocation5 + $0x1a0] sm:$0xff]  ;;  %2514 = vmatpush1.bf16.msra.mxu0 %v3758_v5  ;;  %p4379_p4 = por %p4378_p3, %p4377_p2 }
  0x2f   :  { %v3751_v10 = vcombine.high %v214_v6, %v218_v7  ;;  %v342_v11 = vld [vmem:[#allocation5 + $0x580] sm:$0xff]  ;;  %2554 = vmatprep.subr.bf16.mxu1 %v3887_v8  ;;  %v3750_v18 = vcombine.low %v214_v6, %v218_v7  ;;  %v87_v7 = vrot.slane %v60_v3, 4  ;;  %v123_v8 = vrot.slane %v66_v4, 4 }
  0x30   :  { %v346_v12 = vld [vmem:[#allocation5 + $0x5a0] sm:$0xff]  ;;  %2555 = vmatpush1.bf16.msra.mxu1 %v3886_v9  ;;  %v63_v9 = vld [vmem:[#allocation2 + $0x30] sm:$0xff]  ;;  %p4380_p5 = pnand %p4379_p4, %p4373_p1 }
  0x31   :  { %v206_v13 = vld [vmem:[#allocation5 + $0x140] sm:$0xff]  ;;  %v3879_v14 = vcombine.high %v342_v11, %v346_v12  ;;  %2515 = vmatprep.subr.bf16.mxu0 %v3751_v10  ;;  %v3878_v19 = vcombine.low %v342_v11, %v346_v12  ;;  %v59_v11 = vld [vmem:[#allocation2 + $0x10] sm:$0xff] }
  0x32   :  { %v210_v15 = vld [vmem:[#allocation5 + $0x160] sm:$0xff]  ;;  %2516 = vmatpush1.bf16.msra.mxu0 %v3750_v18  ;;  %v81_v18 = vrot.slane %v59_v11, 4 }
  0x33   :  { %v334_v16 = vld [vmem:[#allocation5 + $0x540] sm:$0xff]  ;;  %v3743_v20 = vcombine.high %v206_v13, %v210_v15  ;;  %2556 = vmatprep.subr.bf16.mxu1 %v3879_v14  ;;  %v3742_v26 = vcombine.low %v206_v13, %v210_v15  ;;  %v76_v15 = vadd.f32 %v75_v1, %v58_v61 }
  0x34   :  { %v338_v17 = vld [vmem:[#allocation5 + $0x560] sm:$0xff]  ;;  %2557 = vmatpush1.bf16.msra.mxu1 %v3878_v19 }
  0x35   :  { %v3871_v21 = vcombine.high %v334_v16, %v338_v17  ;;  %v198_v22 = vld [vmem:[#allocation5 + $0x100] sm:$0xff]  ;;  %2517 = vmatprep.subr.bf16.mxu0 %v3743_v20  ;;  %v3870_v27 = vcombine.low %v334_v16, %v338_v17  ;;  %v112_v16 = vadd.f32 %v111_v2, %v64_v62  ;;  %v105_v17 = vrot.slane %v63_v9, 4 }
  0x36   :  { %v202_v23 = vld [vmem:[#allocation5 + $0x120] sm:$0xff]  ;;  %2518 = vmatpush1.bf16.msra.mxu0 %v3742_v26  ;;  %v88_v20 = vadd.f32 %v87_v7, %v60_v3 }
  0x37   :  { %v326_v24 = vld [vmem:[#allocation5 + $0x500] sm:$0xff]  ;;  %v3735_v28 = vcombine.high %v198_v22, %v202_v23  ;;  %2558 = vmatprep.subr.bf16.mxu1 %v3871_v21  ;;  %v3734_v34 = vcombine.low %v198_v22, %v202_v23  ;;  %v124_v21 = vadd.f32 %v123_v8, %v66_v4  ;;  %v113_v26 = vrot.slane %v112_v16, 2 }
  0x38   :  { %v330_v25 = vld [vmem:[#allocation5 + $0x520] sm:$0xff]  ;;  %2559 = vmatpush1.bf16.msra.mxu1 %v3870_v27 }
  0x39   :  { %v3863_v29 = vcombine.high %v326_v24, %v330_v25  ;;  %v190_v30 = vld [vmem:[#allocation5 + $0xc0] sm:$0xff]  ;;  %2519 = vmatprep.subr.bf16.mxu0 %v3735_v28  ;;  %v3862_v35 = vcombine.low %v326_v24, %v330_v25  ;;  %v77_v25 = vrot.slane %v76_v15, 2  ;;  %v89_v28 = vrot.slane %v88_v20, 2 }
  0x3a   :  { %v194_v31 = vld [vmem:[#allocation5 + $0xe0] sm:$0xff]  ;;  %2520 = vmatpush1.bf16.msra.mxu0 %v3734_v34  ;;  %v114_v34 = vadd.f32 %v113_v26, %v112_v16 }
  0x3b   :  { %v318_v32 = vld [vmem:[#allocation5 + $0x4c0] sm:$0xff]  ;;  %v3727_v36 = vcombine.high %v190_v30, %v194_v31  ;;  %2560 = vmatprep.subr.bf16.mxu1 %v3863_v29  ;;  %v3726_v42 = vcombine.low %v190_v30, %v194_v31  ;;  %v125_v29 = vrot.slane %v124_v21, 2 }
  0x3c   :  { %v322_v33 = vld [vmem:[#allocation5 + $0x4e0] sm:$0xff]  ;;  %2561 = vmatpush1.bf16.msra.mxu1 %v3862_v35  ;;  %v106_v35 = vadd.f32 %v105_v17, %v63_v9 }
  0x3d   :  { %v3855_v37 = vcombine.high %v318_v32, %v322_v33  ;;  %v182_v38 = vld [vmem:[#allocation5 + $0x80] sm:$0xff]  ;;  %2521 = vmatprep.subr.bf16.mxu0 %v3727_v36  ;;  %v3854_v43 = vcombine.low %v318_v32, %v322_v33  ;;  %v78_v33 = vadd.f32 %v77_v25, %v76_v15  ;;  %v82_v36 = vadd.f32 %v81_v18, %v59_v11 }
  0x3e   :  { %v186_v39 = vld [vmem:[#allocation5 + $0xa0] sm:$0xff]  ;;  %2522 = vmatpush1.bf16.msra.mxu0 %v3726_v42 }
  0x3f   :  { %v310_v40 = vld [vmem:[#allocation5 + $0x480] sm:$0xff]  ;;  %v3719_v44 = vcombine.high %v182_v38, %v186_v39  ;;  %2562 = vmatprep.subr.bf16.mxu1 %v3855_v37  ;;  %v3718_v52 = vcombine.low %v182_v38, %v186_v39  ;;  %v90_v37 = vadd.f32 %v89_v28, %v88_v20  ;;  %v126_v38 = vadd.f32 %v125_v29, %v124_v21 }
  0x40   :  { %v314_v41 = vld [vmem:[#allocation5 + $0x4a0] sm:$0xff]  ;;  %2563 = vmatpush1.bf16.msra.mxu1 %v3854_v43  ;;  %v79_v42 = vrot.slane %v78_v33, 1  ;;  %v115_v43 = vrot.slane %v114_v34, 1 }
  0x41   :  { %v174_v45 = vld [vmem:[#allocation5 + $0x40] sm:$0xff]  ;;  %v3847_v46 = vcombine.high %v310_v40, %v314_v41  ;;  %v3846_v53 = vcombine.low %v310_v40, %v314_v41  ;;  %2523 = vmatprep.subr.bf16.mxu0 %v3719_v44 }
  0x42   :  { %v178_v47 = vld [vmem:[#allocation5 + $0x60] sm:$0xff]  ;;  %2524 = vmatpush1.bf16.msra.mxu0 %v3718_v52  ;;  %v80_v52 = vadd.f32 %v79_v42, %v78_v33 }
  0x43   :  { %v302_v48 = vld [vmem:[#allocation5 + $0x440] sm:$0xff]  ;;  %v3711_v56 = vcombine.high %v174_v45, %v178_v47  ;;  %v3710_v58 = vcombine.low %v174_v45, %v178_v47  ;;  %2564 = vmatprep.subr.bf16.mxu1 %v3847_v46  ;;  %v91_v47 = vrot.slane %v90_v37, 1 }
  0x44   :  { %v306_v49 = vld [vmem:[#allocation5 + $0x460] sm:$0xff]  ;;  %2565 = vmatpush1.bf16.msra.mxu1 %v3846_v53  ;;  %v116_v53 = vadd.f32 %v115_v43, %v114_v34  ;;  %v143_v62 = vmul.f32 0.125, %v80_v52 }
  0x45   :  { %v4437_v50 = vld [vmem:[#allocation5] sm:$0xff]  ;;  %v3839_v57 = vcombine.high %v302_v48, %v306_v49  ;;  %v3838_v63 = vcombine.low %v302_v48, %v306_v49  ;;  %2525 = vmatprep.subr.bf16.mxu0 %v3711_v56  ;;  %v127_v48 = vrot.slane %v126_v38, 1 }
  0x46   :  { %v4439_v51 = vld [vmem:[#allocation5 + $0x20] sm:$0xff]  ;;  %2526 = vmatpush1.bf16.msra.mxu0 %v3710_v58 }
  0x47   :  { %v4441_v54 = vld [vmem:[#allocation5 + $0x400] sm:$0xff]  ;;  %v3703_v0 = vcombine.high %v4437_v50, %v4439_v51  ;;  %v3702_v6 = vcombine.low %v4437_v50, %v4439_v51  ;;  %2566 = vmatprep.subr.bf16.mxu1 %v3839_v57  ;;  %v92_v57 = vadd.f32 %v91_v47, %v90_v37  ;;  %v128_v58 = vadd.f32 %v127_v48, %v126_v38 }
  0x48   :  { %v4443_v55 = vld [vmem:[#allocation5 + $0x420] sm:$0xff]  ;;  %2567 = vmatpush1.bf16.msra.mxu1 %v3838_v63  ;;  %v149_v63 = vmul.f32 0.125, %v116_v53 }
  0x49   :  { %v4445_v59 = vld [vmem:[#allocation5 + $0x3c0] sm:$0xff]  ;;  %v3831_v19 = vcombine.high %v4441_v54, %v4443_v55  ;;  %v3830_v23 = vcombine.low %v4441_v54, %v4443_v55  ;;  %2527 = vmatprep.subr.bf16.mxu0 %v3703_v0  ;;  %v107_v54 = vrot.slane %v106_v35, 2  ;;  %v83_v55 = vrot.slane %v82_v36, 2 }
  0x4a   :  { %v4447_v60 = vld [vmem:[#allocation5 + $0x3e0] sm:$0xff]  ;;  %2528 = vmatpush1.bf16.msra.mxu0 %v3702_v6  ;;  %v145_v3 = vmul.f32 0.125, %v92_v57  ;;  %v151_v4 = vmul.f32 0.125, %v128_v58  ;;  %v155_v6 = vpack.c.bf16 %v143_v62, %v143_v62  ;;  %v161_v7 = vpack.c.bf16 %v149_v63, %v149_v63 }
  0x4b   :  { %v57_v5 = vld [vmem:[#allocation2] sm:$0xff]  ;;  %v3823_v24 = vcombine.high %v4445_v59, %v4447_v60  ;;  %2568 = vmatprep.subr.bf16.mxu1 %v3831_v19  ;;  %v3822_v40 = vcombine.low %v4445_v59, %v4447_v60  ;;  %v108_v8 = vadd.f32 %v107_v54, %v106_v35  ;;  %v84_v9 = vadd.f32 %v83_v55, %v82_v36 }
  0x4c   :  { %v69_v10 = vrot.slane %v57_v5, 4  ;;  %v65_v12 = vld [vmem:[#allocation2 + $0x40] sm:$0xff]  ;;  %2569 = vmatpush1.bf16.msra.mxu1 %v3830_v23  ;;  %v563_v16 = vunpack.c.l.b16 %v155_v6  ;;  %v569_v17 = vunpack.c.l.b16 %v161_v7  ;;  %v68_v6 = vld [vmem:[#allocation2 + $0x58] sm:$0xff] }
  0x4d   :  { %v4453_v13 = vld [vmem:[#allocation5 + $0x7c0] sm:$0xff]  ;;  %v117_v22 = vrot.slane %v65_v12, 4  ;;  %2529 = vmatprep.subr.bf16.mxu0 %v3823_v24 }
  0x4e   :  { %v4455_v14 = vld [vmem:[#allocation5 + $0x7e0] sm:$0xff]  ;;  %v70_v30 = vadd.f32 %v69_v10, %v57_v5  ;;  %2530 = vmatpush2.bf16.msra.mxu0 %v3822_v40  ;;  %v576_v25 = vsel %vm574_vm0, %v569_v17, %v563_v16  ;;  %v135_v16 = vrot.slane %v68_v6, 4 }
  0x4f   :  { %v3951_v27 = vcombine.high %v4453_v13, %v4455_v14  ;;  %v4465_v31 = vld [vmem:[#allocation5 + $0x380] sm:$0xff]  ;;  %v118_v39 = vadd.f32 %v117_v22, %v65_v12  ;;  %v3950_v41 = vcombine.low %v4453_v13, %v4455_v14  ;;  %v157_v12 = vpack.c.bf16 %v145_v3, %v145_v3 }
  0x50   :  { %v4467_v32 = vld [vmem:[#allocation5 + $0x3a0] sm:$0xff]  ;;  %v71_v49 = vrot.slane %v70_v30, 2  ;;  %v163_v13 = vpack.c.bf16 %v151_v4, %v151_v4  ;;  %v4486_v28 = vpack.c.b16 %v576_v25, %v576_v25  ;;  %v227_v25 = vld [vmem:[#allocation5 + $0x1e8] sm:$0xff] }
  0x51   :  { %v3815_v44 = vcombine.high %v4465_v31, %v4467_v32  ;;  %v406_v45 = vld [vmem:[#allocation5 + $0x780] sm:$0xff]  ;;  %v3814_v56 = vcombine.low %v4465_v31, %v4467_v32  ;;  %v119_v59 = vrot.slane %v118_v39, 2  ;;  %2570 = vmatprep.subr.bf16.mxu1 %v3951_v27  ;;  %v565_v22 = vunpack.c.l.b16 %v157_v12 }
  0x52   :  { %v410_v46 = vld [vmem:[#allocation5 + $0x7a0] sm:$0xff]  ;;  %v72_v5 = vadd.f32 %v71_v49, %v70_v30  ;;  %2571 = vmatpush2.bf16.msra.mxu1 %v3950_v41  ;;  %v571_v23 = vunpack.c.l.b16 %v163_v13  ;;  %v109_v27 = vrot.slane %v108_v8, 1  ;;  %v85_v30 = vrot.slane %v84_v9, 1  ;;  %2545 = vmatprep.mubr.bf16.mxu0 %v4486_v28 }
  0x53   :  { %v4475_v50 = vld [vmem:[#allocation5 + $0x340] sm:$0xff]  ;;  %v3943_v60 = vcombine.high %v406_v45, %v410_v46  ;;  %v3942_v61 = vcombine.low %v406_v45, %v410_v46  ;;  %2531 = vmatprep.subr.bf16.mxu0 %v3815_v44  ;;  %v120_v14 = vadd.f32 %v119_v59, %v118_v39 }
  0x54   :  { %v4477_v51 = vld [vmem:[#allocation5 + $0x360] sm:$0xff]  ;;  %2532 = vmatpush2.bf16.msra.mxu0 %v3814_v56  ;;  %v73_v26 = vrot.slane %v72_v5, 1  ;;  %v578_v29 = vsel %vm574_vm0, %v571_v23, %v565_v22  ;;  %v110_v41 = vadd.f32 %v109_v27, %v108_v8  ;;  %v86_v43 = vadd.f32 %v85_v30, %v84_v9 }
  0x55   :  { %v3807_v0 = vcombine.high %v4475_v50, %v4477_v51  ;;  %v398_v1 = vld [vmem:[#allocation5 + $0x740] sm:$0xff]  ;;  %2572 = vmatprep.subr.bf16.mxu1 %v3943_v60  ;;  %v3806_v18 = vcombine.low %v4475_v50, %v4477_v51  ;;  %v121_v31 = vrot.slane %v120_v14, 1  ;;  %v4489_v35 = vpack.c.b16 %v578_v29, %v578_v29 }
  0x56   :  { %v402_v2 = vld [vmem:[#allocation5 + $0x760] sm:$0xff]  ;;  %2573 = vmatpush2.bf16.msra.mxu1 %v3942_v61  ;;  %v74_v40 = vadd.f32 %v73_v26, %v72_v5  ;;  %v148_v52 = vmul.f32 0.125, %v110_v41  ;;  %v144_v55 = vmul.f32 0.125, %v86_v43  ;;  %v62_v5 = vld [vmem:[#allocation2 + $0x28] sm:$0xff]  ;;  %v136_v30 = vadd.f32 %v135_v16, %v68_v6 }
  0x57   :  { %v262_v10 = vld [vmem:[#allocation5 + $0x300] sm:$0xff]  ;;  %v3935_v15 = vcombine.high %v398_v1, %v402_v2  ;;  %v3934_v19 = vcombine.low %v398_v1, %v402_v2  ;;  %2533 = vmatprep.subr.bf16.mxu0 %v3807_v0  ;;  %2586 = vmatprep.mubr.bf16.mxu1 %v4489_v35  ;;  %v122_v44 = vadd.f32 %v121_v31, %v120_v14  ;;  %v215_v41 = vld [vmem:[#allocation5 + $0x188] sm:$0xff] }
  0x58   :  { %v266_v11 = vld [vmem:[#allocation5 + $0x320] sm:$0xff]  ;;  %2534 = vmatpush2.bf16.msra.mxu0 %v3806_v18  ;;  %v142_v51 = vmul.f32 0.125, %v74_v40  ;;  %v160_v1 = vpack.c.bf16 %v148_v52, %v148_v52  ;;  %v156_v3 = vpack.c.bf16 %v144_v55, %v144_v55  ;;  %v211_v55 = vld [vmem:[#allocation5 + $0x168] sm:$0xff] }
  0x59   :  { %v390_v20 = vld [vmem:[#allocation5 + $0x700] sm:$0xff]  ;;  %v3799_v24 = vcombine.high %v262_v10, %v266_v11  ;;  %2574 = vmatprep.subr.bf16.mxu1 %v3935_v15  ;;  %v3798_v36 = vcombine.low %v262_v10, %v266_v11  ;;  %v150_v56 = vmul.f32 0.125, %v122_v44  ;;  %v99_v15 = vrot.slane %v62_v5, 4 }
  0x5a   :  { %v394_v21 = vld [vmem:[#allocation5 + $0x720] sm:$0xff]  ;;  %2575 = vmatpush2.bf16.msra.mxu1 %v3934_v19  ;;  %v154_v0 = vpack.c.bf16 %v142_v51, %v142_v51  ;;  %v568_v14 = vunpack.c.l.b16 %v160_v1  ;;  %v564_v19 = vunpack.c.l.b16 %v156_v3  ;;  %v203_v1 = vld [vmem:[#allocation5 + $0x128] sm:$0xff] }
  0x5b   :  { %v3927_v32 = vcombine.high %v390_v20, %v394_v21  ;;  %v254_v33 = vld [vmem:[#allocation5 + $0x2c0] sm:$0xff]  ;;  %v3926_v39 = vcombine.low %v390_v20, %v394_v21  ;;  %2535 = vmatprep.subr.bf16.mxu0 %v3799_v24  ;;  %v162_v4 = vpack.c.bf16 %v150_v56, %v150_v56  ;;  %v223_v24 = vld [vmem:[#allocation5 + $0x1c8] sm:$0xff]  ;;  %v100_v29 = vadd.f32 %v99_v15, %v62_v5 }
  0x5c   :  { %v258_v34 = vld [vmem:[#allocation5 + $0x2e0] sm:$0xff]  ;;  %2536 = vmatpush2.bf16.msra.mxu0 %v3798_v36  ;;  %v562_v13 = vunpack.c.l.b16 %v154_v0  ;;  %v199_v0 = vld [vmem:[#allocation5 + $0x108] sm:$0xff] }
  0x5d   :  { %v382_v37 = vld [vmem:[#allocation5 + $0x6c0] sm:$0xff]  ;;  %v3791_v42 = vcombine.high %v254_v33, %v258_v34  ;;  %2576 = vmatprep.subr.bf16.mxu1 %v3927_v32  ;;  %v3790_v50 = vcombine.low %v254_v33, %v258_v34  ;;  %v570_v20 = vunpack.c.l.b16 %v162_v4  ;;  %v3761_v34 = vcombine.high %v223_v24, %v227_v25 }
  0x5e   :  { %v386_v38 = vld [vmem:[#allocation5 + $0x6e0] sm:$0xff]  ;;  %2577 = vmatpush2.bf16.msra.mxu1 %v3926_v39  ;;  %v575_v27 = vsel %vm574_vm0, %v568_v14, %v562_v13  ;;  %v137_v39 = vrot.slane %v136_v30, 2  ;;  %v195_v13 = vld [vmem:[#allocation5 + $0xe8] sm:$0xff] }
  0x5f   :  { %v3919_v45 = vcombine.high %v382_v37, %v386_v38  ;;  %v246_v46 = vld [vmem:[#allocation5 + $0x280] sm:$0xff]  ;;  %2537 = vmatprep.subr.bf16.mxu0 %v3791_v42  ;;  %v3918_v53 = vcombine.low %v382_v37, %v386_v38  ;;  %v577_v32 = vsel %vm574_vm0, %v570_v20, %v564_v19  ;;  %v101_v38 = vrot.slane %v100_v29, 2  ;;  %v219_v42 = vld [vmem:[#allocation5 + $0x1a8] sm:$0xff] }
  0x60   :  { %v250_v47 = vld [vmem:[#allocation5 + $0x2a0] sm:$0xff]  ;;  %2538 = vmatpush2.bf16.msra.mxu0 %v3790_v50  ;;  %v4495_v40 = vpack.c.b16 %v575_v27, %v575_v27  ;;  %v4497_v43 = vpack.c.b16 %v577_v32, %v577_v32  ;;  %v175_v32 = vld [vmem:[#allocation5 + $0x48] sm:$0xff] }
  0x61   :  { %v374_v48 = vld [vmem:[#allocation5 + $0x680] sm:$0xff]  ;;  %v3783_v54 = vcombine.high %v246_v46, %v250_v47  ;;  %2578 = vmatprep.subr.bf16.mxu1 %v3919_v45  ;;  %v3782_v62 = vcombine.low %v246_v46, %v250_v47  ;;  %v102_v45 = vadd.f32 %v101_v38, %v100_v29  ;;  %v138_v46 = vadd.f32 %v137_v39, %v136_v30 }
  0x62   :  { %v378_v49 = vld [vmem:[#allocation5 + $0x6a0] sm:$0xff]  ;;  %2579 = vmatpush2.bf16.msra.mxu1 %v3918_v53  ;;  %v3760_v47 = vcombine.low %v223_v24, %v227_v25  ;;  %v187_v25 = vld [vmem:[#allocation5 + $0xa8] sm:$0xff] }
  0x63   :  { %v3911_v57 = vcombine.high %v374_v48, %v378_v49  ;;  %v238_v58 = vld [vmem:[#allocation5 + $0x240] sm:$0xff]  ;;  %v3910_v63 = vcombine.low %v374_v48, %v378_v49  ;;  %2539 = vmatprep.subr.bf16.mxu0 %v3783_v54  ;;  %v3753_v49 = vcombine.high %v215_v41, %v219_v42  ;;  %v103_v52 = vrot.slane %v102_v45, 1  ;;  %v207_v54 = vld [vmem:[#allocation5 + $0x148] sm:$0xff] }
  0x64   :  { %v242_v59 = vld [vmem:[#allocation5 + $0x260] sm:$0xff]  ;;  %2540 = vmatpush2.bf16.msra.mxu0 %v3782_v62  ;;  %v139_v53 = vrot.slane %v138_v46, 1  ;;  %v3745_v62 = vcombine.high %v207_v54, %v211_v55 }
  0x65   :  { %v366_v60 = vld [vmem:[#allocation5 + $0x640] sm:$0xff]  ;;  %v3775_v2 = vcombine.high %v238_v58, %v242_v59  ;;  %2580 = vmatprep.subr.bf16.mxu1 %v3911_v57  ;;  %v3774_v10 = vcombine.low %v238_v58, %v242_v59  ;;  %v104_v57 = vadd.f32 %v103_v52, %v102_v45  ;;  %v3752_v59 = vcombine.low %v215_v41, %v219_v42  ;;  %v167_v45 = vld [vmem:[#allocation5 + $0x8] sm:$0xff] }
  0x66   :  { %v370_v61 = vld [vmem:[#allocation5 + $0x660] sm:$0xff]  ;;  %2581 = vmatpush2.bf16.msra.mxu1 %v3910_v63  ;;  %v140_v58 = vadd.f32 %v139_v53, %v138_v46  ;;  %v171_v46 = vld [vmem:[#allocation5 + $0x28] sm:$0xff] }
  0x67   :  { %v3903_v7 = vcombine.high %v366_v60, %v370_v61  ;;  %v230_v8 = vld [vmem:[#allocation5 + $0x200] sm:$0xff]  ;;  %2541 = vmatprep.subr.bf16.mxu0 %v3775_v2  ;;  %v3902_v17 = vcombine.low %v366_v60, %v370_v61  ;;  %v147_v2 = vmul.f32 0.125, %v104_v57  ;;  %v291_v57 = vld [vmem:[#allocation5 + $0x3e8] sm:$0xff] }
  0x68   :  { %v234_v9 = vld [vmem:[#allocation5 + $0x220] sm:$0xff]  ;;  %2542 = vmatpush2.bf16.msra.mxu0 %v3774_v10  ;;  %v153_v3 = vmul.f32 0.125, %v140_v58 }
  0x69   :  { %v358_v11 = vld [vmem:[#allocation5 + $0x600] sm:$0xff]  ;;  %v3767_v18 = vcombine.high %v230_v8, %v234_v9  ;;  %2582 = vmatprep.subr.bf16.mxu1 %v3903_v7  ;;  %v3766_v26 = vcombine.low %v230_v8, %v234_v9  ;;  %v159_v5 = vpack.c.bf16 %v147_v2, %v147_v2  ;;  %v3744_v7 = vcombine.low %v207_v54, %v211_v55  ;;  %v287_v55 = vld [vmem:[#allocation5 + $0x3c8] sm:$0xff] }
  0x6a   :  { %v362_v12 = vld [vmem:[#allocation5 + $0x620] sm:$0xff]  ;;  %2583 = vmatpush2.bf16.msra.mxu1 %v3902_v17  ;;  %v165_v6 = vpack.c.bf16 %v153_v3, %v153_v3  ;;  %v283_v2 = vld [vmem:[#allocation5 + $0x3a8] sm:$0xff]  ;;  %v3825_v3 = vcombine.high %v287_v55, %v291_v57 }
  0x6b   :  { %v3895_v21 = vcombine.high %v358_v11, %v362_v12  ;;  %v478_v22 = vld [vmem:[#allocation5 + $0x9c0] sm:$0xff]  ;;  %2543 = vmatprep.subr.bf16.mxu0 %v3767_v18  ;;  %v3894_v31 = vcombine.low %v358_v11, %v362_v12  ;;  %v191_v11 = vld [vmem:[#allocation5 + $0xc8] sm:$0xff]  ;;  %v3737_v12 = vcombine.high %v199_v0, %v203_v1  ;;  %v567_v14 = vunpack.c.l.b16 %v159_v5 }
  0x6c   :  { %v482_v23 = vld [vmem:[#allocation5 + $0x9e0] sm:$0xff]  ;;  %2544 = vmatpush2.bf16.msra.mxu0 %v3766_v26  ;;  %v573_v15 = vunpack.c.l.b16 %v165_v6  ;;  %v3736_v18 = vcombine.low %v199_v0, %v203_v1  ;;  %v3729_v24 = vcombine.high %v191_v11, %v195_v13  ;;  %v3728_v30 = vcombine.low %v191_v11, %v195_v13  ;;  %v279_v1 = vld [vmem:[#allocation5 + $0x388] sm:$0xff] }
  0x6d   :  { %v4015_v33 = vcombine.high %v478_v22, %v482_v23  ;;  %2584 = vmatprep.subr.bf16.mxu1 %v3895_v21  ;;  %v470_v36 = vld [vmem:[#allocation5 + $0x980] sm:$0xff]  ;;  %v4014_v44 = vcombine.low %v478_v22, %v482_v23  ;;  %v183_v22 = vld [vmem:[#allocation5 + $0x88] sm:$0xff] }
  0x6e   :  { %v474_v37 = vld [vmem:[#allocation5 + $0x9a0] sm:$0xff]  ;;  %2585 = vmatpush2.bf16.msra.mxu1 %v3894_v31  ;;  %v580_v17 = vsel %vm574_vm0, %v573_v15, %v567_v14  ;;  %v3720_v41 = vcombine.low %v183_v22, %v187_v25  ;;  %v271_v11 = vld [vmem:[#allocation5 + $0x348] sm:$0xff] }
  0x6f   :  { %2595 = vmatprep.subr.bf16.mxu0 %v4015_v33  ;;  %v4007_v48 = vcombine.high %v470_v36, %v474_v37  ;;  %2636 = vmatprep.subr.bf16.mxu1 %v3761_v34  ;;  %v462_v50 = vld [vmem:[#allocation5 + $0x940] sm:$0xff]  ;;  %v4006_v56 = vcombine.low %v470_v36, %v474_v37  ;;  %v4503_v23 = vpack.c.b16 %v580_v17, %v580_v17  ;;  %v179_v33 = vld [vmem:[#allocation5 + $0x68] sm:$0xff]  ;;  %v67_v37 = vld [vmem:[#allocation2 + $0x50] sm:$0xff] }
  0x70   :  { %v466_v51 = vld [vmem:[#allocation5 + $0x960] sm:$0xff]  ;;  %2546 = vmatmul.mubr.bf16.vlgmr.msra.gmra.mxu0 %v4495_v40  ;;  %v3721_v36 = vcombine.high %v183_v22, %v187_v25  ;;  %v275_v13 = vld [vmem:[#allocation5 + $0x368] sm:$0xff] }
  0x71   :  { %2587 = vmatmul.mubr.bf16.vlgmr.msra.gmra.mxu1 %v4497_v43  ;;  %2596 = vmatpush1.bf16.msra.mxu0 %v4014_v44  ;;  %v3999_v60 = vcombine.high %v462_v50, %v466_v51  ;;  %v454_v61 = vld [vmem:[#allocation5 + $0x900] sm:$0xff]  ;;  %v3998_v4 = vcombine.low %v462_v50, %v466_v51  ;;  %v3712_v51 = vcombine.low %v175_v32, %v179_v33  ;;  %v267_v22 = vld [vmem:[#allocation5 + $0x328] sm:$0xff] }
  0x72   :  { %2637 = vmatpush1.bf16.msra.mxu1 %v3760_v47  ;;  %2597 = vmatprep.subr.bf16.mxu0 %v4007_v48  ;;  %v458_v63 = vld [vmem:[#allocation5 + $0x920] sm:$0xff]  ;;  %v3713_v47 = vcombine.high %v175_v32, %v179_v33  ;;  %v255_v33 = vld [vmem:[#allocation5 + $0x2c8] sm:$0xff] }
  0x73   :  { %2638 = vmatprep.subr.bf16.mxu1 %v3753_v49  ;;  %2668 = vmatprep.mubr.bf16.mxu1 %v4486_v28  ;;  %v3991_v8 = vcombine.high %v454_v61, %v458_v63  ;;  %v446_v9 = vld [vmem:[#allocation5 + $0x8c0] sm:$0xff]  ;;  %v3990_v16 = vcombine.low %v454_v61, %v458_v63  ;;  %v129_v49 = vrot.slane %v67_v37, 4 }
  0x74   :  { %v450_v10 = vld [vmem:[#allocation5 + $0x8e0] sm:$0xff]  ;;  %2627 = vmatprep.mubr.bf16.mxu0 %v4503_v23 }
  0x75   :  { %2598 = vmatpush1.bf16.msra.mxu0 %v4006_v56  ;;  %v3983_v19 = vcombine.high %v446_v9, %v450_v10  ;;  %v438_v20 = vld [vmem:[#allocation5 + $0x880] sm:$0xff]  ;;  %v3982_v26 = vcombine.low %v446_v9, %v450_v10  ;;  %v3705_v56 = vcombine.high %v167_v45, %v171_v46 }
  0x76   :  { %2639 = vmatpush1.bf16.msra.mxu1 %v3752_v59  ;;  %2599 = vmatprep.subr.bf16.mxu0 %v3999_v60  ;;  %v442_v21 = vld [vmem:[#allocation5 + $0x8a0] sm:$0xff]  ;;  %v130_v59 = vadd.f32 %v129_v49, %v67_v37 }
  0x77   :  { %2640 = vmatprep.subr.bf16.mxu1 %v3745_v62  ;;  %v430_v27 = vld [vmem:[#allocation5 + $0x840] sm:$0xff]  ;;  %v3975_v31 = vcombine.high %v438_v20, %v442_v21  ;;  %v3974_v38 = vcombine.low %v438_v20, %v442_v21  ;;  %v3704_v62 = vcombine.low %v167_v45, %v171_v46  ;;  %v263_v21 = vld [vmem:[#allocation5 + $0x308] sm:$0xff] }
  0x78   :  { %v434_v29 = vld [vmem:[#allocation5 + $0x860] sm:$0xff]  ;;  %v131_v5 = vrot.slane %v130_v59, 2  ;;  %v247_v46 = vld [vmem:[#allocation5 + $0x288] sm:$0xff] }
  0x79   :  { %2600 = vmatpush1.bf16.msra.mxu0 %v3998_v4  ;;  %v61_v34 = vld [vmem:[#allocation2 + $0x20] sm:$0xff]  ;;  %v3967_v42 = vcombine.high %v430_v27, %v434_v29  ;;  %v3966_v50 = vcombine.low %v430_v27, %v434_v29  ;;  %v3808_v29 = vcombine.low %v271_v11, %v275_v13 }
  0x7a   :  { %2641 = vmatpush1.bf16.msra.mxu1 %v3744_v7  ;;  %2601 = vmatprep.subr.bf16.mxu0 %v3991_v8  ;;  %v422_v39 = vld [vmem:[#allocation5 + $0x800] sm:$0xff]  ;;  %v93_v48 = vrot.slane %v61_v34, 4  ;;  %v3824_v7 = vcombine.low %v287_v55, %v291_v57  ;;  %v132_v15 = vadd.f32 %v131_v5, %v130_v59 }
  0x7b   :  { %2642 = vmatprep.subr.bf16.mxu1 %v3737_v12  ;;  %v426_v44 = vld [vmem:[#allocation5 + $0x820] sm:$0xff]  ;;  %v3817_v12 = vcombine.high %v279_v1, %v283_v2 }
  0x7c   :  { %v3959_v52 = vcombine.high %v422_v39, %v426_v44  ;;  %v542_v53 = vld [vmem:[#allocation5 + $0xbc0] sm:$0xff]  ;;  %v94_v58 = vadd.f32 %v93_v48, %v61_v34  ;;  %v3958_v60 = vcombine.low %v422_v39, %v426_v44  ;;  %v3801_v34 = vcombine.high %v263_v21, %v267_v22 }
  0x7d   :  { %2602 = vmatpush1.bf16.msra.mxu0 %v3990_v16  ;;  %v546_v54 = vld [vmem:[#allocation5 + $0xbe0] sm:$0xff] }
  0x7e   :  { %2643 = vmatpush1.bf16.msra.mxu1 %v3736_v18  ;;  %2603 = vmatprep.subr.bf16.mxu0 %v3983_v19  ;;  %v534_v61 = vld [vmem:[#allocation5 + $0xb80] sm:$0xff]  ;;  %v4079_v63 = vcombine.high %v542_v53, %v546_v54  ;;  %v95_v4 = vrot.slane %v94_v58, 2  ;;  %v4078_v6 = vcombine.low %v542_v53, %v546_v54  ;;  %v3816_v18 = vcombine.low %v279_v1, %v283_v2  ;;  %v231_v2 = vld [vmem:[#allocation5 + $0x208] sm:$0xff] }
  0x7f   :  { %2644 = vmatprep.subr.bf16.mxu1 %v3729_v24  ;;  %v538_v0 = vld [vmem:[#allocation5 + $0xba0] sm:$0xff]  ;;  %v3809_v24 = vcombine.high %v271_v11, %v275_v13  ;;  %v355_v11 = vld [vmem:[#allocation5 + $0x5e8] sm:$0xff] }
  0x80   :  { %v4071_v8 = vcombine.high %v534_v61, %v538_v0  ;;  %v526_v9 = vld [vmem:[#allocation5 + $0xb40] sm:$0xff]  ;;  %v96_v14 = vadd.f32 %v95_v4, %v94_v58  ;;  %v4070_v16 = vcombine.low %v534_v61, %v538_v0  ;;  %v243_v58 = vld [vmem:[#allocation5 + $0x268] sm:$0xff] }
  0x81   :  { %2604 = vmatpush1.bf16.msra.mxu0 %v3982_v26  ;;  %v530_v10 = vld [vmem:[#allocation5 + $0xb60] sm:$0xff]  ;;  %v133_v26 = vrot.slane %v132_v15, 1  ;;  %v235_v4 = vld [vmem:[#allocation5 + $0x228] sm:$0xff] }
  0x82   :  { %2645 = vmatpush1.bf16.msra.mxu1 %v3728_v30  ;;  %2605 = vmatprep.subr.bf16.mxu0 %v3975_v31  ;;  %v518_v17 = vld [vmem:[#allocation5 + $0xb00] sm:$0xff]  ;;  %v4063_v19 = vcombine.high %v526_v9, %v530_v10  ;;  %v97_v25 = vrot.slane %v96_v14, 1  ;;  %v4062_v27 = vcombine.low %v526_v9, %v530_v10  ;;  %v351_v10 = vld [vmem:[#allocation5 + $0x5c8] sm:$0xff]  ;;  %v3769_v13 = vcombine.high %v231_v2, %v235_v4 }
  0x83   :  { %2646 = vmatprep.subr.bf16.mxu1 %v3721_v36  ;;  %v522_v20 = vld [vmem:[#allocation5 + $0xb20] sm:$0xff]  ;;  %v259_v36 = vld [vmem:[#allocation5 + $0x2e8] sm:$0xff] }
  0x84   :  { %v4055_v30 = vcombine.high %v518_v17, %v522_v20  ;;  %v510_v31 = vld [vmem:[#allocation5 + $0xac0] sm:$0xff]  ;;  %v98_v37 = vadd.f32 %v97_v25, %v96_v14  ;;  %v4054_v39 = vcombine.low %v518_v17, %v522_v20  ;;  %v3793_v48 = vcombine.high %v255_v33, %v259_v36  ;;  %v483_v14 = vld [vmem:[#allocation5 + $0x9e8] sm:$0xff] }
  0x85   :  { %2606 = vmatpush1.bf16.msra.mxu0 %v3974_v38  ;;  %v514_v32 = vld [vmem:[#allocation5 + $0xae0] sm:$0xff]  ;;  %v134_v38 = vadd.f32 %v133_v26, %v132_v15  ;;  %v3768_v17 = vcombine.low %v231_v2, %v235_v4  ;;  %v347_v20 = vld [vmem:[#allocation5 + $0x5a8] sm:$0xff]  ;;  %v3888_v26 = vcombine.low %v351_v10, %v355_v11 }
  0x86   :  { %2647 = vmatpush1.bf16.msra.mxu1 %v3720_v41  ;;  %2607 = vmatprep.subr.bf16.mxu0 %v3967_v42  ;;  %v502_v41 = vld [vmem:[#allocation5 + $0xa80] sm:$0xff]  ;;  %v3800_v42 = vcombine.low %v263_v21, %v267_v22  ;;  %v4047_v44 = vcombine.high %v510_v31, %v514_v32  ;;  %v146_v49 = vmul.f32 0.125, %v98_v37  ;;  %v471_v21 = vld [vmem:[#allocation5 + $0x988] sm:$0xff] }
  0x87   :  { %2648 = vmatprep.subr.bf16.mxu1 %v3713_v47  ;;  %v506_v45 = vld [vmem:[#allocation5 + $0xaa0] sm:$0xff]  ;;  %v251_v47 = vld [vmem:[#allocation5 + $0x2a8] sm:$0xff] }
  0x88   :  { %v4039_v53 = vcombine.high %v502_v41, %v506_v45  ;;  %v494_v54 = vld [vmem:[#allocation5 + $0xa40] sm:$0xff]  ;;  %v3785_v57 = vcombine.high %v247_v46, %v251_v47  ;;  %v4038_v59 = vcombine.low %v502_v41, %v506_v45  ;;  %v459_v45 = vld [vmem:[#allocation5 + $0x928] sm:$0xff] }
  0x89   :  { %2608 = vmatpush1.bf16.msra.mxu0 %v3966_v50  ;;  %v152_v50 = vmul.f32 0.125, %v134_v38  ;;  %v498_v55 = vld [vmem:[#allocation5 + $0xa60] sm:$0xff]  ;;  %v303_v2 = vld [vmem:[#allocation5 + $0x448] sm:$0xff] }
  0x8a   :  { %2649 = vmatpush1.bf16.msra.mxu1 %v3712_v51  ;;  %2609 = vmatprep.subr.bf16.mxu0 %v3959_v52  ;;  %v4046_v51 = vcombine.low %v510_v31, %v514_v32  ;;  %v3792_v52 = vcombine.low %v255_v33, %v259_v36  ;;  %v486_v0 = vld [vmem:[#allocation5 + $0xa00] sm:$0xff]  ;;  %v4030_v5 = vcombine.low %v494_v54, %v498_v55  ;;  %v339_v31 = vld [vmem:[#allocation5 + $0x568] sm:$0xff] }
  0x8b   :  { %2650 = vmatprep.subr.bf16.mxu1 %v3705_v56  ;;  %v239_v56 = vld [vmem:[#allocation5 + $0x248] sm:$0xff]  ;;  %v164_v61 = vpack.c.bf16 %v152_v50, %v152_v50  ;;  %v490_v1 = vld [vmem:[#allocation5 + $0xa20] sm:$0xff] }
  0x8c   :  { %v4023_v9 = vcombine.high %v486_v0, %v490_v1  ;;  %v4022_v15 = vcombine.low %v486_v0, %v490_v1  ;;  %v463_v32 = vld [vmem:[#allocation5 + $0x948] sm:$0xff] }
  0x8d   :  { %2610 = vmatpush1.bf16.msra.mxu0 %v3958_v60  ;;  %v158_v60 = vpack.c.bf16 %v146_v49, %v146_v49  ;;  %v319_v50 = vld [vmem:[#allocation5 + $0x4c8] sm:$0xff] }
  0x8e   :  { %2651 = vmatpush1.bf16.msra.mxu1 %v3704_v62  ;;  %2611 = vmatprep.subr.bf16.mxu0 %v4079_v63  ;;  %v3784_v62 = vcombine.low %v247_v46, %v251_v47  ;;  %v4031_v63 = vcombine.high %v494_v54, %v498_v55  ;;  %v431_v4 = vld [vmem:[#allocation5 + $0x848] sm:$0xff] }
  0x8f   :  { %2652 = vmatprep.subr.bf16.mxu1 %v3825_v3  ;;  %v3777_v3 = vcombine.high %v239_v56, %v243_v58 }
  0x91   :  { %2612 = vmatpush2.bf16.msra.mxu0 %v4078_v6  ;;  %v566_v6 = vunpack.c.l.b16 %v158_v60  ;;  %v439_v60 = vld [vmem:[#allocation5 + $0x888] sm:$0xff] }
  0x92   :  { %2653 = vmatpush2.bf16.msra.mxu1 %v3824_v7  ;;  %2613 = vmatprep.subr.bf16.mxu0 %v4071_v8  ;;  %v572_v7 = vunpack.c.l.b16 %v164_v61  ;;  %v3776_v8 = vcombine.low %v239_v56, %v243_v58  ;;  %v311_v58 = vld [vmem:[#allocation5 + $0x488] sm:$0xff] }
  0x93   :  { %2654 = vmatprep.subr.bf16.mxu1 %v3817_v12  ;;  %v479_v12 = vld [vmem:[#allocation5 + $0x9c8] sm:$0xff] }
  0x94   :  { %v4017_v22 = vcombine.high %v479_v12, %v483_v14  ;;  %v443_v61 = vld [vmem:[#allocation5 + $0x8a8] sm:$0xff] }
  0x95   :  { %2614 = vmatpush2.bf16.msra.mxu0 %v4070_v16  ;;  %v579_v16 = vsel %vm574_vm0, %v572_v7, %v566_v6  ;;  %v3977_v1 = vcombine.high %v439_v60, %v443_v61  ;;  %v3976_v7 = vcombine.low %v439_v60, %v443_v61 }
  0x96   :  { %2655 = vmatpush2.bf16.msra.mxu1 %v3816_v18  ;;  %2615 = vmatprep.subr.bf16.mxu0 %v4063_v19  ;;  %v3889_v18 = vcombine.high %v351_v10, %v355_v11  ;;  %v343_v19 = vld [vmem:[#allocation5 + $0x588] sm:$0xff]  ;;  %v4507_v25 = vpack.c.b16 %v579_v16, %v579_v16 }
  0x97   :  { %2656 = vmatprep.subr.bf16.mxu1 %v3809_v24  ;;  %v475_v24 = vld [vmem:[#allocation5 + $0x9a8] sm:$0xff]  ;;  %v3880_v36 = vcombine.low %v343_v19, %v347_v20 }
  0x98   :  { %v4009_v33 = vcombine.high %v471_v21, %v475_v24  ;;  %v4008_v37 = vcombine.low %v471_v21, %v475_v24  ;;  %v295_v10 = vld [vmem:[#allocation5 + $0x408] sm:$0xff] }
  0x99   :  { %2616 = vmatpush2.bf16.msra.mxu0 %v4062_v27  ;;  %v4016_v27 = vcombine.low %v479_v12, %v483_v14  ;;  %v299_v11 = vld [vmem:[#allocation5 + $0x428] sm:$0xff] }
  0x9a   :  { %2657 = vmatpush2.bf16.msra.mxu1 %v3808_v29  ;;  %2617 = vmatprep.subr.bf16.mxu0 %v4055_v30  ;;  %v3881_v29 = vcombine.high %v343_v19, %v347_v20  ;;  %v335_v30 = vld [vmem:[#allocation5 + $0x548] sm:$0xff]  ;;  %v3833_v16 = vcombine.high %v295_v10, %v299_v11 }
  0x9b   :  { %2658 = vmatprep.subr.bf16.mxu1 %v3801_v34  ;;  %v467_v34 = vld [vmem:[#allocation5 + $0x968] sm:$0xff]  ;;  %v3873_v38 = vcombine.high %v335_v30, %v339_v31  ;;  %v3872_v46 = vcombine.low %v335_v30, %v339_v31 }
  0x9c   :  { %v4001_v41 = vcombine.high %v463_v32, %v467_v34  ;;  %v4000_v47 = vcombine.low %v463_v32, %v467_v34  ;;  %v423_v12 = vld [vmem:[#allocation5 + $0x808] sm:$0xff] }
  0x9d   :  { %2618 = vmatpush2.bf16.msra.mxu0 %v4054_v39  ;;  %v327_v39 = vld [vmem:[#allocation5 + $0x508] sm:$0xff] }
  0x9e   :  { %2659 = vmatpush2.bf16.msra.mxu1 %v3800_v42  ;;  %2619 = vmatprep.subr.bf16.mxu0 %v4047_v44  ;;  %v331_v42 = vld [vmem:[#allocation5 + $0x528] sm:$0xff] }
  0x9f   :  { %2660 = vmatprep.subr.bf16.mxu1 %v3793_v48  ;;  %v455_v44 = vld [vmem:[#allocation5 + $0x908] sm:$0xff]  ;;  %v3865_v48 = vcombine.high %v327_v39, %v331_v42  ;;  %v3864_v54 = vcombine.low %v327_v39, %v331_v42 }
  0xa0   :  { %v3993_v49 = vcombine.high %v455_v44, %v459_v45  ;;  %v3992_v55 = vcombine.low %v455_v44, %v459_v45  ;;  %v419_v19 = vld [vmem:[#allocation5 + $0x7e8] sm:$0xff] }
  0xa1   :  { %2620 = vmatpush2.bf16.msra.mxu0 %v4046_v51  ;;  %v323_v51 = vld [vmem:[#allocation5 + $0x4e8] sm:$0xff] }
  0xa2   :  { %2661 = vmatpush2.bf16.msra.mxu1 %v3792_v52  ;;  %2621 = vmatprep.subr.bf16.mxu0 %v4039_v53  ;;  %v447_v52 = vld [vmem:[#allocation5 + $0x8c8] sm:$0xff]  ;;  %v3857_v56 = vcombine.high %v319_v50, %v323_v51 }
  0xa3   :  { %2662 = vmatprep.subr.bf16.mxu1 %v3785_v57  ;;  %v451_v53 = vld [vmem:[#allocation5 + $0x8e8] sm:$0xff] }
  0xa4   :  { %v3985_v57 = vcombine.high %v447_v52, %v451_v53  ;;  %v543_v20 = vld [vmem:[#allocation5 + $0xbc8] sm:$0xff] }
  0xa5   :  { %2622 = vmatpush2.bf16.msra.mxu0 %v4038_v59  ;;  %v315_v59 = vld [vmem:[#allocation5 + $0x4a8] sm:$0xff] }
  0xa6   :  { %2663 = vmatpush2.bf16.msra.mxu1 %v3784_v62  ;;  %2623 = vmatprep.subr.bf16.mxu0 %v4031_v63  ;;  %v3856_v62 = vcombine.low %v319_v50, %v323_v51  ;;  %v3984_v63 = vcombine.low %v447_v52, %v451_v53  ;;  %v3849_v0 = vcombine.high %v311_v58, %v315_v59  ;;  %v547_v21 = vld [vmem:[#allocation5 + $0xbe8] sm:$0xff] }
  0xa7   :  { %2664 = vmatprep.subr.bf16.mxu1 %v3777_v3  ;;  %v307_v3 = vld [vmem:[#allocation5 + $0x468] sm:$0xff]  ;;  %v3848_v6 = vcombine.low %v311_v58, %v315_v59  ;;  %v4080_v34 = vcombine.low %v543_v20, %v547_v21 }
  0xa8   :  { %v3840_v14 = vcombine.low %v303_v2, %v307_v3  ;;  %v411_v30 = vld [vmem:[#allocation5 + $0x7a8] sm:$0xff] }
  0xa9   :  { %2624 = vmatpush2.bf16.msra.mxu0 %v4030_v5  ;;  %v435_v5 = vld [vmem:[#allocation5 + $0x868] sm:$0xff] }
  0xaa   :  { %2665 = vmatpush2.bf16.msra.mxu1 %v3776_v8  ;;  %2625 = vmatprep.subr.bf16.mxu0 %v4023_v9  ;;  %v3841_v8 = vcombine.high %v303_v2, %v307_v3  ;;  %v3969_v9 = vcombine.high %v431_v4, %v435_v5  ;;  %v535_v31 = vld [vmem:[#allocation5 + $0xb88] sm:$0xff] }
  0xab   :  { %2666 = vmatprep.subr.bf16.mxu1 %v3769_v13  ;;  %v427_v13 = vld [vmem:[#allocation5 + $0x828] sm:$0xff] }
  0xac   :  { %v3960_v24 = vcombine.low %v423_v12, %v427_v13  ;;  %v539_v32 = vld [vmem:[#allocation5 + $0xba8] sm:$0xff] }
  0xad   :  { %2626 = vmatpush2.bf16.msra.mxu0 %v4022_v15  ;;  %v3968_v15 = vcombine.low %v431_v4, %v435_v5  ;;  %v403_v39 = vld [vmem:[#allocation5 + $0x768] sm:$0xff]  ;;  %v4072_v45 = vcombine.low %v535_v31, %v539_v32 }
  0xae   :  { %2667 = vmatpush2.bf16.msra.mxu1 %v3768_v17  ;;  %2677 = vmatprep.subr.bf16.mxu0 %v3889_v18  ;;  %v3961_v17 = vcombine.high %v423_v12, %v427_v13  ;;  %v415_v18 = vld [vmem:[#allocation5 + $0x7c8] sm:$0xff] }
  0xaf   :  { %2718 = vmatprep.subr.bf16.mxu1 %v4017_v22  ;;  %v3832_v22 = vcombine.low %v295_v10, %v299_v11  ;;  %v531_v42 = vld [vmem:[#allocation5 + $0xb68] sm:$0xff] }
  0xb0   :  { %2628 = vmatmul.mubr.bf16.vlgmr.msra.gmra.mxu0 %v4507_v25  ;;  %v519_v50 = vld [vmem:[#allocation5 + $0xb08] sm:$0xff] }
  0xb1   :  { %2669 = vmatmul.mubr.bf16.vlgmr.msra.gmra.mxu1 %v4495_v40  ;;  %2678 = vmatpush1.bf16.msra.mxu0 %v3888_v26  ;;  %v3953_v26 = vcombine.high %v415_v18, %v419_v19  ;;  %v523_v51 = vld [vmem:[#allocation5 + $0xb28] sm:$0xff] }
  0xb2   :  { %2719 = vmatpush1.bf16.msra.mxu1 %v4016_v27  ;;  %2679 = vmatprep.subr.bf16.mxu0 %v3881_v29  ;;  %v4081_v27 = vcombine.high %v543_v20, %v547_v21  ;;  %v407_v29 = vld [vmem:[#allocation5 + $0x788] sm:$0xff]  ;;  %v4056_v61 = vcombine.low %v519_v50, %v523_v51 }
  0xb3   :  { %2720 = vmatprep.subr.bf16.mxu1 %v4009_v33  ;;  %2709 = vmatprep.mubr.bf16.mxu0 %v4489_v35  ;;  %v3952_v33 = vcombine.low %v415_v18, %v419_v19  ;;  %v3944_v44 = vcombine.low %v407_v29, %v411_v30  ;;  %v511_v58 = vld [vmem:[#allocation5 + $0xac8] sm:$0xff] }
  0xb4   :  { %2750 = vmatprep.mubr.bf16.mxu1 %v4503_v23  ;;  %v515_v59 = vld [vmem:[#allocation5 + $0xae8] sm:$0xff] }
  0xb5   :  { %2680 = vmatpush1.bf16.msra.mxu0 %v3880_v36  ;;  %v3945_v36 = vcombine.high %v407_v29, %v411_v30  ;;  %v503_v2 = vld [vmem:[#allocation5 + $0xa88] sm:$0xff]  ;;  %v4048_v5 = vcombine.low %v511_v58, %v515_v59  ;;  %v352_v29 = vld [vmem:[#allocation5 + $0x5d0] sm:$0xff] }
  0xb6   :  { %2721 = vmatpush1.bf16.msra.mxu1 %v4008_v37  ;;  %2681 = vmatprep.subr.bf16.mxu0 %v3873_v38  ;;  %v4073_v37 = vcombine.high %v535_v31, %v539_v32  ;;  %v399_v38 = vld [vmem:[#allocation5 + $0x748] sm:$0xff]  ;;  %v356_v30 = vld [vmem:[#allocation5 + $0x5f0] sm:$0xff] }
  0xb7   :  { %2722 = vmatprep.subr.bf16.mxu1 %v4001_v41  ;;  %v527_v41 = vld [vmem:[#allocation5 + $0xb48] sm:$0xff]  ;;  %v3936_v52 = vcombine.low %v399_v38, %v403_v39 }
  0xb8   :  { %v4064_v53 = vcombine.low %v527_v41, %v531_v42  ;;  %v507_v3 = vld [vmem:[#allocation5 + $0xaa8] sm:$0xff] }
  0xb9   :  { %2682 = vmatpush1.bf16.msra.mxu0 %v3872_v46  ;;  %v3937_v46 = vcombine.high %v399_v38, %v403_v39  ;;  %v495_v10 = vld [vmem:[#allocation5 + $0xa48] sm:$0xff]  ;;  %v4040_v13 = vcombine.low %v503_v2, %v507_v3  ;;  %v344_v38 = vld [vmem:[#allocation5 + $0x590] sm:$0xff] }
  0xba   :  { %2723 = vmatpush1.bf16.msra.mxu1 %v4000_v47  ;;  %2683 = vmatprep.subr.bf16.mxu0 %v3865_v48  ;;  %v4065_v47 = vcombine.high %v527_v41, %v531_v42  ;;  %v391_v48 = vld [vmem:[#allocation5 + $0x708] sm:$0xff]  ;;  %v348_v39 = vld [vmem:[#allocation5 + $0x5b0] sm:$0xff]  ;;  %v3890_v42 = vcombine.low %v352_v29, %v356_v30 }
  0xbb   :  { %2724 = vmatprep.subr.bf16.mxu1 %v3993_v49  ;;  %v395_v49 = vld [vmem:[#allocation5 + $0x728] sm:$0xff] }
  0xbc   :  { %v3928_v60 = vcombine.low %v391_v48, %v395_v49  ;;  %v499_v11 = vld [vmem:[#allocation5 + $0xa68] sm:$0xff] }
  0xbd   :  { %2684 = vmatpush1.bf16.msra.mxu0 %v3864_v54  ;;  %v3929_v54 = vcombine.high %v391_v48, %v395_v49  ;;  %v487_v18 = vld [vmem:[#allocation5 + $0xa08] sm:$0xff]  ;;  %v4032_v21 = vcombine.low %v495_v10, %v499_v11  ;;  %v336_v48 = vld [vmem:[#allocation5 + $0x550] sm:$0xff] }
  0xbe   :  { %2725 = vmatpush1.bf16.msra.mxu1 %v3992_v55  ;;  %2685 = vmatprep.subr.bf16.mxu0 %v3857_v56  ;;  %v4057_v55 = vcombine.high %v519_v50, %v523_v51  ;;  %v383_v56 = vld [vmem:[#allocation5 + $0x6c8] sm:$0xff]  ;;  %v340_v49 = vld [vmem:[#allocation5 + $0x570] sm:$0xff]  ;;  %v3882_v51 = vcombine.low %v344_v38, %v348_v39 }
  0xbf   :  { %2726 = vmatprep.subr.bf16.mxu1 %v3985_v57  ;;  %v387_v57 = vld [vmem:[#allocation5 + $0x6e8] sm:$0xff] }
  0xc0   :  { %v3920_v4 = vcombine.low %v383_v56, %v387_v57  ;;  %v491_v19 = vld [vmem:[#allocation5 + $0xa28] sm:$0xff] }
  0xc1   :  { %2686 = vmatpush1.bf16.msra.mxu0 %v3856_v62  ;;  %v3921_v62 = vcombine.high %v383_v56, %v387_v57  ;;  %v4024_v32 = vcombine.low %v487_v18, %v491_v19  ;;  %v328_v56 = vld [vmem:[#allocation5 + $0x510] sm:$0xff] }
  0xc2   :  { %2727 = vmatpush1.bf16.msra.mxu1 %v3984_v63  ;;  %2687 = vmatprep.subr.bf16.mxu0 %v3849_v0  ;;  %v4049_v63 = vcombine.high %v511_v58, %v515_v59  ;;  %v375_v0 = vld [vmem:[#allocation5 + $0x688] sm:$0xff]  ;;  %v332_v57 = vld [vmem:[#allocation5 + $0x530] sm:$0xff]  ;;  %v3874_v59 = vcombine.low %v336_v48, %v340_v49 }
  0xc3   :  { %2728 = vmatprep.subr.bf16.mxu1 %v3977_v1  ;;  %v379_v1 = vld [vmem:[#allocation5 + $0x6a8] sm:$0xff] }
  0xc4   :  { %v3912_v12 = vcombine.low %v375_v0, %v379_v1 }
  0xc5   :  { %2688 = vmatpush1.bf16.msra.mxu0 %v3848_v6  ;;  %v3913_v6 = vcombine.high %v375_v0, %v379_v1  ;;  %v320_v0 = vld [vmem:[#allocation5 + $0x4d0] sm:$0xff] }
  0xc6   :  { %2729 = vmatpush1.bf16.msra.mxu1 %v3976_v7  ;;  %2689 = vmatprep.subr.bf16.mxu0 %v3841_v8  ;;  %v4041_v7 = vcombine.high %v503_v2, %v507_v3  ;;  %v367_v8 = vld [vmem:[#allocation5 + $0x648] sm:$0xff]  ;;  %v324_v1 = vld [vmem:[#allocation5 + $0x4f0] sm:$0xff]  ;;  %v3866_v3 = vcombine.low %v328_v56, %v332_v57 }
  0xc7   :  { %2730 = vmatprep.subr.bf16.mxu1 %v3969_v9  ;;  %v371_v9 = vld [vmem:[#allocation5 + $0x668] sm:$0xff] }
  0xc8   :  { %v3904_v20 = vcombine.low %v367_v8, %v371_v9 }
  0xc9   :  { %2690 = vmatpush1.bf16.msra.mxu0 %v3840_v14  ;;  %v3905_v14 = vcombine.high %v367_v8, %v371_v9  ;;  %v312_v8 = vld [vmem:[#allocation5 + $0x490] sm:$0xff] }
  0xca   :  { %2731 = vmatpush1.bf16.msra.mxu1 %v3968_v15  ;;  %2691 = vmatprep.subr.bf16.mxu0 %v3833_v16  ;;  %v4033_v15 = vcombine.high %v495_v10, %v499_v11  ;;  %v359_v16 = vld [vmem:[#allocation5 + $0x608] sm:$0xff]  ;;  %v316_v9 = vld [vmem:[#allocation5 + $0x4b0] sm:$0xff]  ;;  %v3858_v11 = vcombine.low %v320_v0, %v324_v1 }
  0xcb   :  { %2732 = vmatprep.subr.bf16.mxu1 %v3961_v17  ;;  %v363_v17 = vld [vmem:[#allocation5 + $0x628] sm:$0xff] }
  0xcc   :  { %v3896_v31 = vcombine.low %v359_v16, %v363_v17 }
  0xcd   :  { %2692 = vmatpush1.bf16.msra.mxu0 %v3832_v22  ;;  %v3897_v22 = vcombine.high %v359_v16, %v363_v17  ;;  %v304_v16 = vld [vmem:[#allocation5 + $0x450] sm:$0xff] }
  0xce   :  { %2733 = vmatpush1.bf16.msra.mxu1 %v3960_v24  ;;  %2693 = vmatprep.subr.bf16.mxu0 %v3953_v26  ;;  %v4025_v24 = vcombine.high %v487_v18, %v491_v19  ;;  %v224_v26 = vld [vmem:[#allocation5 + $0x1d0] sm:$0xff]  ;;  %v3850_v19 = vcombine.low %v312_v8, %v316_v9 }
  0xcf   :  { %2734 = vmatprep.subr.bf16.mxu1 %v4081_v27  ;;  %v228_v27 = vld [vmem:[#allocation5 + $0x1f0] sm:$0xff] }
  0xd0   :  { %v3762_v41 = vcombine.low %v224_v26, %v228_v27  ;;  %v308_v17 = vld [vmem:[#allocation5 + $0x470] sm:$0xff] }
  0xd1   :  { %2694 = vmatpush2.bf16.msra.mxu0 %v3952_v33  ;;  %v3763_v33 = vcombine.high %v224_v26, %v228_v27  ;;  %v296_v26 = vld [vmem:[#allocation5 + $0x410] sm:$0xff] }
  0xd2   :  { %2735 = vmatpush2.bf16.msra.mxu1 %v4080_v34  ;;  %2695 = vmatprep.subr.bf16.mxu0 %v3945_v36  ;;  %v3891_v34 = vcombine.high %v352_v29, %v356_v30  ;;  %v216_v36 = vld [vmem:[#allocation5 + $0x190] sm:$0xff]  ;;  %v3842_v30 = vcombine.low %v304_v16, %v308_v17 }
  0xd3   :  { %2736 = vmatprep.subr.bf16.mxu1 %v4073_v37  ;;  %v220_v37 = vld [vmem:[#allocation5 + $0x1b0] sm:$0xff] }
  0xd4   :  { %v3754_v50 = vcombine.low %v216_v36, %v220_v37  ;;  %v300_v27 = vld [vmem:[#allocation5 + $0x430] sm:$0xff] }
  0xd5   :  { %2696 = vmatpush2.bf16.msra.mxu0 %v3944_v44  ;;  %v3755_v44 = vcombine.high %v216_v36, %v220_v37  ;;  %v416_v36 = vld [vmem:[#allocation5 + $0x7d0] sm:$0xff] }
  0xd6   :  { %2737 = vmatpush2.bf16.msra.mxu1 %v4072_v45  ;;  %2697 = vmatprep.subr.bf16.mxu0 %v3937_v46  ;;  %v3883_v45 = vcombine.high %v344_v38, %v348_v39  ;;  %v208_v46 = vld [vmem:[#allocation5 + $0x150] sm:$0xff]  ;;  %v3834_v39 = vcombine.low %v296_v26, %v300_v27 }
  0xd7   :  { %2738 = vmatprep.subr.bf16.mxu1 %v4065_v47  ;;  %v212_v47 = vld [vmem:[#allocation5 + $0x170] sm:$0xff] }
  0xd8   :  { %v3746_v58 = vcombine.low %v208_v46, %v212_v47  ;;  %v420_v37 = vld [vmem:[#allocation5 + $0x7f0] sm:$0xff] }
  0xd9   :  { %2698 = vmatpush2.bf16.msra.mxu0 %v3936_v52  ;;  %v3747_v52 = vcombine.high %v208_v46, %v212_v47  ;;  %v408_v46 = vld [vmem:[#allocation5 + $0x790] sm:$0xff] }
  0xda   :  { %2739 = vmatpush2.bf16.msra.mxu1 %v4064_v53  ;;  %2699 = vmatprep.subr.bf16.mxu0 %v3929_v54  ;;  %v3875_v53 = vcombine.high %v336_v48, %v340_v49  ;;  %v200_v54 = vld [vmem:[#allocation5 + $0x110] sm:$0xff]  ;;  %v3954_v49 = vcombine.low %v416_v36, %v420_v37 }
  0xdb   :  { %2740 = vmatprep.subr.bf16.mxu1 %v4057_v55  ;;  %v204_v55 = vld [vmem:[#allocation5 + $0x130] sm:$0xff] }
  0xdc   :  { %v3738_v2 = vcombine.low %v200_v54, %v204_v55  ;;  %v412_v47 = vld [vmem:[#allocation5 + $0x7b0] sm:$0xff] }
  0xdd   :  { %2700 = vmatpush2.bf16.msra.mxu0 %v3928_v60  ;;  %v3739_v60 = vcombine.high %v200_v54, %v204_v55  ;;  %v400_v54 = vld [vmem:[#allocation5 + $0x750] sm:$0xff] }
  0xde   :  { %2741 = vmatpush2.bf16.msra.mxu1 %v4056_v61  ;;  %2701 = vmatprep.subr.bf16.mxu0 %v3921_v62  ;;  %v3867_v61 = vcombine.high %v328_v56, %v332_v57  ;;  %v192_v62 = vld [vmem:[#allocation5 + $0xd0] sm:$0xff]  ;;  %v3946_v57 = vcombine.low %v408_v46, %v412_v47 }
  0xdf   :  { %2742 = vmatprep.subr.bf16.mxu1 %v4049_v63  ;;  %v196_v63 = vld [vmem:[#allocation5 + $0xf0] sm:$0xff] }
  0xe0   :  { %v3730_v10 = vcombine.low %v192_v62, %v196_v63  ;;  %v404_v55 = vld [vmem:[#allocation5 + $0x770] sm:$0xff] }
  0xe1   :  { %2702 = vmatpush2.bf16.msra.mxu0 %v3920_v4  ;;  %v3731_v4 = vcombine.high %v192_v62, %v196_v63  ;;  %v392_v62 = vld [vmem:[#allocation5 + $0x710] sm:$0xff] }
  0xe2   :  { %2743 = vmatpush2.bf16.msra.mxu1 %v4048_v5  ;;  %2703 = vmatprep.subr.bf16.mxu0 %v3913_v6  ;;  %v3859_v5 = vcombine.high %v320_v0, %v324_v1  ;;  %v184_v6 = vld [vmem:[#allocation5 + $0x90] sm:$0xff]  ;;  %v3938_v1 = vcombine.low %v400_v54, %v404_v55 }
  0xe3   :  { %2744 = vmatprep.subr.bf16.mxu1 %v4041_v7  ;;  %v188_v7 = vld [vmem:[#allocation5 + $0xb0] sm:$0xff] }
  0xe4   :  { %v3722_v18 = vcombine.low %v184_v6, %v188_v7  ;;  %v396_v63 = vld [vmem:[#allocation5 + $0x730] sm:$0xff] }
  0xe5   :  { %2704 = vmatpush2.bf16.msra.mxu0 %v3912_v12  ;;  %v3723_v12 = vcombine.high %v184_v6, %v188_v7  ;;  %v384_v6 = vld [vmem:[#allocation5 + $0x6d0] sm:$0xff] }
  0xe6   :  { %2745 = vmatpush2.bf16.msra.mxu1 %v4040_v13  ;;  %2705 = vmatprep.subr.bf16.mxu0 %v3905_v14  ;;  %v3851_v13 = vcombine.high %v312_v8, %v316_v9  ;;  %v176_v14 = vld [vmem:[#allocation5 + $0x50] sm:$0xff]  ;;  %v3930_v9 = vcombine.low %v392_v62, %v396_v63 }
  0xe7   :  { %2746 = vmatprep.subr.bf16.mxu1 %v4033_v15  ;;  %v180_v15 = vld [vmem:[#allocation5 + $0x70] sm:$0xff] }
  0xe8   :  { %v3714_v29 = vcombine.low %v176_v14, %v180_v15  ;;  %v388_v7 = vld [vmem:[#allocation5 + $0x6f0] sm:$0xff] }
  0xe9   :  { %2706 = vmatpush2.bf16.msra.mxu0 %v3904_v20  ;;  %v3715_v20 = vcombine.high %v176_v14, %v180_v15  ;;  %v376_v14 = vld [vmem:[#allocation5 + $0x690] sm:$0xff] }
  0xea   :  { %2747 = vmatpush2.bf16.msra.mxu1 %v4032_v21  ;;  %2707 = vmatprep.subr.bf16.mxu0 %v3897_v22  ;;  %v3843_v21 = vcombine.high %v304_v16, %v308_v17  ;;  %v168_v22 = vld [vmem:[#allocation5 + $0x10] sm:$0xff]  ;;  %v3922_v17 = vcombine.low %v384_v6, %v388_v7 }
  0xeb   :  { %2748 = vmatprep.subr.bf16.mxu1 %v4025_v24  ;;  %v172_v24 = vld [vmem:[#allocation5 + $0x30] sm:$0xff] }
  0xec   :  { %v3706_v38 = vcombine.low %v168_v22, %v172_v24  ;;  %v380_v15 = vld [vmem:[#allocation5 + $0x6b0] sm:$0xff] }
  0xed   :  { %2708 = vmatpush2.bf16.msra.mxu0 %v3896_v31  ;;  %v3707_v31 = vcombine.high %v168_v22, %v172_v24  ;;  %v368_v22 = vld [vmem:[#allocation5 + $0x650] sm:$0xff] }
  0xee   :  { %2749 = vmatpush2.bf16.msra.mxu1 %v4024_v32  ;;  %2759 = vmatprep.subr.bf16.mxu0 %v3763_v33  ;;  %v3835_v32 = vcombine.high %v296_v26, %v300_v27  ;;  %v288_v33 = vld [vmem:[#allocation5 + $0x3d0] sm:$0xff]  ;;  %v3914_v27 = vcombine.low %v376_v14, %v380_v15 }
  0xef   :  { %2800 = vmatprep.subr.bf16.mxu1 %v3891_v34  ;;  %v292_v34 = vld [vmem:[#allocation5 + $0x3f0] sm:$0xff] }
  0xf0   :  { %2710 = vmatmul.mubr.bf16.vlgmr.msra.gmra.mxu0 %v4497_v43  ;;  %v3826_v48 = vcombine.low %v288_v33, %v292_v34  ;;  %v372_v24 = vld [vmem:[#allocation5 + $0x670] sm:$0xff] }
  0xf1   :  { %2751 = vmatmul.mubr.bf16.vlgmr.msra.gmra.mxu1 %v4507_v25  ;;  %2760 = vmatpush1.bf16.msra.mxu0 %v3762_v41  ;;  %v3827_v41 = vcombine.high %v288_v33, %v292_v34  ;;  %v360_v33 = vld [vmem:[#allocation5 + $0x610] sm:$0xff] }
  0xf2   :  { %2801 = vmatpush1.bf16.msra.mxu1 %v3890_v42  ;;  %2761 = vmatprep.subr.bf16.mxu0 %v3755_v44  ;;  %v3955_v42 = vcombine.high %v416_v36, %v420_v37  ;;  %v280_v44 = vld [vmem:[#allocation5 + $0x390] sm:$0xff]  ;;  %v3906_v37 = vcombine.low %v368_v22, %v372_v24 }
  0xf3   :  { %2802 = vmatprep.subr.bf16.mxu1 %v3883_v45  ;;  %2791 = vmatprep.mubr.bf16.mxu0 %v4486_v28  ;;  %v284_v45 = vld [vmem:[#allocation5 + $0x3b0] sm:$0xff] }
  0xf4   :  { %2832 = vmatprep.mubr.bf16.mxu1 %v4489_v35  ;;  %v3818_v56 = vcombine.low %v280_v44, %v284_v45  ;;  %v364_v34 = vld [vmem:[#allocation5 + $0x630] sm:$0xff] }
  0xf5   :  { %2762 = vmatpush1.bf16.msra.mxu0 %v3754_v50  ;;  %v3819_v50 = vcombine.high %v280_v44, %v284_v45  ;;  %v225_v44 = vld [vmem:[#allocation5 + $0x1d8] sm:$0xff] }
  0xf6   :  { %2803 = vmatpush1.bf16.msra.mxu1 %v3882_v51  ;;  %2763 = vmatprep.subr.bf16.mxu0 %v3747_v52  ;;  %v3947_v51 = vcombine.high %v408_v46, %v412_v47  ;;  %v272_v52 = vld [vmem:[#allocation5 + $0x350] sm:$0xff]  ;;  %v229_v45 = vld [vmem:[#allocation5 + $0x1f8] sm:$0xff]  ;;  %v3898_v47 = vcombine.low %v360_v33, %v364_v34 }
  0xf7   :  { %2804 = vmatprep.subr.bf16.mxu1 %v3875_v53  ;;  %v276_v53 = vld [vmem:[#allocation5 + $0x370] sm:$0xff] }
  0xf8   :  { %v3810_v0 = vcombine.low %v272_v52, %v276_v53 }
  0xf9   :  { %2764 = vmatpush1.bf16.msra.mxu0 %v3746_v58  ;;  %v3811_v58 = vcombine.high %v272_v52, %v276_v53  ;;  %v217_v52 = vld [vmem:[#allocation5 + $0x198] sm:$0xff] }
  0xfa   :  { %2805 = vmatpush1.bf16.msra.mxu1 %v3874_v59  ;;  %2765 = vmatprep.subr.bf16.mxu0 %v3739_v60  ;;  %v3939_v59 = vcombine.high %v400_v54, %v404_v55  ;;  %v264_v60 = vld [vmem:[#allocation5 + $0x310] sm:$0xff]  ;;  %v221_v53 = vld [vmem:[#allocation5 + $0x1b8] sm:$0xff]  ;;  %v3764_v55 = vcombine.low %v225_v44, %v229_v45 }
  0xfb   :  { %2806 = vmatprep.subr.bf16.mxu1 %v3867_v61  ;;  %v268_v61 = vld [vmem:[#allocation5 + $0x330] sm:$0xff] }
  0xfc   :  { %v3802_v8 = vcombine.low %v264_v60, %v268_v61 }
  0xfd   :  { %2766 = vmatpush1.bf16.msra.mxu0 %v3738_v2  ;;  %v3803_v2 = vcombine.high %v264_v60, %v268_v61  ;;  %v209_v61 = vld [vmem:[#allocation5 + $0x158] sm:$0xff] }
  0xfe   :  { %2807 = vmatpush1.bf16.msra.mxu1 %v3866_v3  ;;  %2767 = vmatprep.subr.bf16.mxu0 %v3731_v4  ;;  %v3931_v3 = vcombine.high %v392_v62, %v396_v63  ;;  %v256_v4 = vld [vmem:[#allocation5 + $0x2d0] sm:$0xff]  ;;  %v213_v62 = vld [vmem:[#allocation5 + $0x178] sm:$0xff] }
  0xff   :  { %2808 = vmatprep.subr.bf16.mxu1 %v3859_v5  ;;  %v260_v5 = vld [vmem:[#allocation5 + $0x2f0] sm:$0xff] }
 0x100   :  { %v3794_v16 = vcombine.low %v256_v4, %v260_v5 }
 0x101   :  { %2768 = vmatpush1.bf16.msra.mxu0 %v3730_v10  ;;  %v3795_v10 = vcombine.high %v256_v4, %v260_v5 }
 0x102   :  { %2809 = vmatpush1.bf16.msra.mxu1 %v3858_v11  ;;  %2769 = vmatprep.subr.bf16.mxu0 %v3723_v12  ;;  %v3923_v11 = vcombine.high %v384_v6, %v388_v7  ;;  %v248_v12 = vld [vmem:[#allocation5 + $0x290] sm:$0xff]  ;;  %v3749_v6 = vcombine.high %v209_v61, %v213_v62 }
 0x103   :  { %2810 = vmatprep.subr.bf16.mxu1 %v3851_v13  ;;  %v252_v13 = vld [vmem:[#allocation5 + $0x2b0] sm:$0xff] }
 0x104   :  { %v3786_v26 = vcombine.low %v248_v12, %v252_v13  ;;  %v456_v7 = vld [vmem:[#allocation5 + $0x910] sm:$0xff] }
 0x105   :  { %2770 = vmatpush1.bf16.msra.mxu0 %v3722_v18  ;;  %v3787_v18 = vcombine.high %v248_v12, %v252_v13  ;;  %v205_v12 = vld [vmem:[#allocation5 + $0x138] sm:$0xff] }
 0x106   :  { %2811 = vmatpush1.bf16.msra.mxu1 %v3850_v19  ;;  %2771 = vmatprep.subr.bf16.mxu0 %v3715_v20  ;;  %v3915_v19 = vcombine.high %v376_v14, %v380_v15  ;;  %v240_v20 = vld [vmem:[#allocation5 + $0x250] sm:$0xff] }
 0x107   :  { %2812 = vmatprep.subr.bf16.mxu1 %v3843_v21  ;;  %v244_v21 = vld [vmem:[#allocation5 + $0x270] sm:$0xff] }
 0x108   :  { %v3778_v36 = vcombine.low %v240_v20, %v244_v21 }
 0x109   :  { %2772 = vmatpush1.bf16.msra.mxu0 %v3714_v29  ;;  %v3779_v29 = vcombine.high %v240_v20, %v244_v21  ;;  %v448_v20 = vld [vmem:[#allocation5 + $0x8d0] sm:$0xff] }
 0x10a   :  { %2813 = vmatpush1.bf16.msra.mxu1 %v3842_v30  ;;  %2773 = vmatprep.subr.bf16.mxu0 %v3707_v31  ;;  %v3907_v30 = vcombine.high %v368_v22, %v372_v24  ;;  %v232_v31 = vld [vmem:[#allocation5 + $0x210] sm:$0xff]  ;;  %v193_v22 = vld [vmem:[#allocation5 + $0xd8] sm:$0xff] }
 0x10b   :  { %2814 = vmatprep.subr.bf16.mxu1 %v3835_v32  ;;  %v236_v32 = vld [vmem:[#allocation5 + $0x230] sm:$0xff]  ;;  %v197_v24 = vld [vmem:[#allocation5 + $0xf8] sm:$0xff] }
 0x10c   :  { %v3770_v46 = vcombine.low %v232_v31, %v236_v32  ;;  %v452_v21 = vld [vmem:[#allocation5 + $0x8f0] sm:$0xff] }
 0x10d   :  { %2774 = vmatpush1.bf16.msra.mxu0 %v3706_v38  ;;  %v3771_v38 = vcombine.high %v232_v31, %v236_v32  ;;  %v444_v31 = vld [vmem:[#allocation5 + $0x8b0] sm:$0xff]  ;;  %v185_v32 = vld [vmem:[#allocation5 + $0x98] sm:$0xff] }
 0x10e   :  { %2815 = vmatpush1.bf16.msra.mxu1 %v3834_v39  ;;  %2775 = vmatprep.subr.bf16.mxu0 %v3827_v41  ;;  %v3899_v39 = vcombine.high %v360_v33, %v364_v34  ;;  %v480_v41 = vld [vmem:[#allocation5 + $0x9d0] sm:$0xff]  ;;  %v189_v33 = vld [vmem:[#allocation5 + $0xb8] sm:$0xff]  ;;  %v3986_v34 = vcombine.low %v448_v20, %v452_v21 }
 0x10f   :  { %2816 = vmatprep.subr.bf16.mxu1 %v3955_v42  ;;  %v484_v42 = vld [vmem:[#allocation5 + $0x9f0] sm:$0xff] }
 0x110   :  { %v4018_v54 = vcombine.low %v480_v41, %v484_v42 }
 0x111   :  { %2776 = vmatpush2.bf16.msra.mxu0 %v3826_v48  ;;  %v4019_v48 = vcombine.high %v480_v41, %v484_v42  ;;  %v436_v41 = vld [vmem:[#allocation5 + $0x870] sm:$0xff]  ;;  %v177_v42 = vld [vmem:[#allocation5 + $0x58] sm:$0xff] }
 0x112   :  { %2817 = vmatpush2.bf16.msra.mxu1 %v3954_v49  ;;  %2777 = vmatprep.subr.bf16.mxu0 %v3819_v50  ;;  %v3765_v49 = vcombine.high %v225_v44, %v229_v45  ;;  %v472_v50 = vld [vmem:[#allocation5 + $0x990] sm:$0xff]  ;;  %v181_v44 = vld [vmem:[#allocation5 + $0x78] sm:$0xff] }
 0x113   :  { %2818 = vmatprep.subr.bf16.mxu1 %v3947_v51  ;;  %v476_v51 = vld [vmem:[#allocation5 + $0x9b0] sm:$0xff] }
 0x115   :  { %2778 = vmatpush2.bf16.msra.mxu0 %v3818_v56  ;;  %v4011_v56 = vcombine.high %v472_v50, %v476_v51 }
 0x116   :  { %2819 = vmatpush2.bf16.msra.mxu1 %v3946_v57  ;;  %2779 = vmatprep.subr.bf16.mxu0 %v3811_v58  ;;  %v3757_v57 = vcombine.high %v217_v52, %v221_v53  ;;  %v464_v58 = vld [vmem:[#allocation5 + $0x950] sm:$0xff] }
 0x117   :  { %2820 = vmatprep.subr.bf16.mxu1 %v3939_v59  ;;  %v468_v59 = vld [vmem:[#allocation5 + $0x970] sm:$0xff] }
 0x118   :  { %v4003_v4 = vcombine.high %v464_v58, %v468_v59  ;;  %v4002_v14 = vcombine.low %v464_v58, %v468_v59  ;;  %v548_v58 = vld [vmem:[#allocation5 + $0xbf0] sm:$0xff]  ;;  %v289_v59 = vld [vmem:[#allocation5 + $0x3d8] sm:$0xff] }
 0x119   :  { %2780 = vmatpush2.bf16.msra.mxu0 %v3810_v0  ;;  %v4010_v0 = vcombine.low %v472_v50, %v476_v51  ;;  %v428_v50 = vld [vmem:[#allocation5 + $0x830] sm:$0xff]  ;;  %v169_v51 = vld [vmem:[#allocation5 + $0x18] sm:$0xff] }
 0x11a   :  { %2821 = vmatpush2.bf16.msra.mxu1 %v3938_v1  ;;  %2781 = vmatprep.subr.bf16.mxu0 %v3803_v2 }
 0x11b   :  { %2822 = vmatprep.subr.bf16.mxu1 %v3931_v3  ;;  %v3756_v3 = vcombine.low %v217_v52, %v221_v53  ;;  %v173_v52 = vld [vmem:[#allocation5 + $0x38] sm:$0xff] }
 0x11d   :  { %2782 = vmatpush2.bf16.msra.mxu0 %v3802_v8  ;;  %v460_v8 = vld [vmem:[#allocation5 + $0x930] sm:$0xff] }
 0x11e   :  { %2823 = vmatpush2.bf16.msra.mxu1 %v3930_v9  ;;  %2783 = vmatprep.subr.bf16.mxu0 %v3795_v10 }
 0x11f   :  { %2824 = vmatprep.subr.bf16.mxu1 %v3923_v11  ;;  %v201_v11 = vld [vmem:[#allocation5 + $0x118] sm:$0xff] }
 0x121   :  { %2784 = vmatpush2.bf16.msra.mxu0 %v3794_v16  ;;  %v3748_v16 = vcombine.low %v209_v61, %v213_v62  ;;  %v3708_v62 = vcombine.low %v169_v51, %v173_v52 }
 0x122   :  { %2825 = vmatpush2.bf16.msra.mxu1 %v3922_v17  ;;  %2785 = vmatprep.subr.bf16.mxu0 %v3787_v18  ;;  %v3995_v17 = vcombine.high %v456_v7, %v460_v8 }
 0x123   :  { %2826 = vmatprep.subr.bf16.mxu1 %v3915_v19  ;;  %v3741_v19 = vcombine.high %v201_v11, %v205_v12 }
 0x125   :  { %2786 = vmatpush2.bf16.msra.mxu0 %v3786_v26  ;;  %v3994_v26 = vcombine.low %v456_v7, %v460_v8 }
 0x126   :  { %2827 = vmatpush2.bf16.msra.mxu1 %v3914_v27  ;;  %2787 = vmatprep.subr.bf16.mxu0 %v3779_v29  ;;  %v3987_v27 = vcombine.high %v448_v20, %v452_v21  ;;  %v3733_v29 = vcombine.high %v193_v22, %v197_v24  ;;  %v524_v20 = vld [vmem:[#allocation5 + $0xb30] sm:$0xff]  ;;  %v265_v21 = vld [vmem:[#allocation5 + $0x318] sm:$0xff] }
 0x127   :  { %2828 = vmatprep.subr.bf16.mxu1 %v3907_v30  ;;  %v440_v30 = vld [vmem:[#allocation5 + $0x890] sm:$0xff] }
 0x128   :  { %v3978_v45 = vcombine.low %v440_v30, %v444_v31 }
 0x129   :  { %2788 = vmatpush2.bf16.msra.mxu0 %v3778_v36  ;;  %v3732_v36 = vcombine.low %v193_v22, %v197_v24  ;;  %v269_v22 = vld [vmem:[#allocation5 + $0x338] sm:$0xff] }
 0x12a   :  { %2829 = vmatpush2.bf16.msra.mxu1 %v3906_v37  ;;  %2789 = vmatprep.subr.bf16.mxu0 %v3771_v38  ;;  %v3979_v37 = vcombine.high %v440_v30, %v444_v31  ;;  %v3725_v38 = vcombine.high %v185_v32, %v189_v33  ;;  %v516_v30 = vld [vmem:[#allocation5 + $0xaf0] sm:$0xff]  ;;  %v257_v31 = vld [vmem:[#allocation5 + $0x2d8] sm:$0xff] }
 0x12b   :  { %2830 = vmatprep.subr.bf16.mxu1 %v3899_v39  ;;  %v432_v39 = vld [vmem:[#allocation5 + $0x850] sm:$0xff] }
 0x12c   :  { %v3970_v53 = vcombine.low %v432_v39, %v436_v41 }
 0x12d   :  { %2790 = vmatpush2.bf16.msra.mxu0 %v3770_v46  ;;  %v3724_v46 = vcombine.low %v185_v32, %v189_v33  ;;  %v261_v32 = vld [vmem:[#allocation5 + $0x2f8] sm:$0xff] }
 0x12e   :  { %2831 = vmatpush2.bf16.msra.mxu1 %v3898_v47  ;;  %2841 = vmatprep.subr.bf16.mxu0 %v4019_v48  ;;  %v3971_v47 = vcombine.high %v432_v39, %v436_v41  ;;  %v3717_v48 = vcombine.high %v177_v42, %v181_v44  ;;  %v508_v39 = vld [vmem:[#allocation5 + $0xab0] sm:$0xff]  ;;  %v249_v41 = vld [vmem:[#allocation5 + $0x298] sm:$0xff] }
 0x12f   :  { %2882 = vmatprep.subr.bf16.mxu1 %v3765_v49  ;;  %v424_v49 = vld [vmem:[#allocation5 + $0x810] sm:$0xff] }
 0x130   :  { %v2547_v60 = vpop.f32.mrf.mxu0  ;;  %2792 = vmatmul.mubr.bf16.vlgmr.msra.gmra.mxu0 %v4495_v40  ;;  %v3962_v61 = vcombine.low %v424_v49, %v428_v50 }
 0x131   :  { %v2588_v63 = vpop.f32.mrf.mxu1  ;;  %2833 = vmatmul.mubr.bf16.vlgmr.msra.gmra.mxu1 %v4497_v43  ;;  %2842 = vmatpush1.bf16.msra.mxu0 %v4018_v54  ;;  %v3716_v54 = vcombine.low %v177_v42, %v181_v44  ;;  %v253_v42 = vld [vmem:[#allocation5 + $0x2b8] sm:$0xff] }
 0x132   :  { %v4519_v1 = vadd.f32 %v2588_v63, %v2547_v60  ;;  %2883 = vmatpush1.bf16.msra.mxu1 %v3764_v55  ;;  %v2549_v2 = vpop.f32.mrf.mxu0  ;;  %2843 = vmatprep.subr.bf16.mxu0 %v4011_v56  ;;  %v3963_v55 = vcombine.high %v424_v49, %v428_v50  ;;  %v3709_v56 = vcombine.high %v169_v51, %v173_v52  ;;  %v293_v60 = vld [vmem:[#allocation5 + $0x3f8] sm:$0xff]  ;;  %v500_v49 = vld [vmem:[#allocation5 + $0xa70] sm:$0xff] }
 0x133   :  { %v2590_v5 = vpop.f32.mrf.mxu1  ;;  %2884 = vmatprep.subr.bf16.mxu1 %v3757_v57  ;;  %2873 = vmatprep.mubr.bf16.mxu0 %v4503_v23  ;;  %v544_v57 = vld [vmem:[#allocation5 + $0xbd0] sm:$0xff]  ;;  %v3828_v7 = vcombine.low %v289_v59, %v293_v60  ;;  %v241_v50 = vld [vmem:[#allocation5 + $0x258] sm:$0xff] }
 0x134   :  { %v4522_v9 = vadd.f32 %v2590_v5, %v2549_v2  ;;  %v2551_v10 = vpop.f32.mrf.mxu0  ;;  %2914 = vmatprep.mubr.bf16.mxu1 %v4486_v28  ;;  %v3740_v28 = vcombine.low %v201_v11, %v205_v12  ;;  %v4083_v63 = vcombine.high %v544_v57, %v548_v58  ;;  %v536_v2 = vld [vmem:[#allocation5 + $0xb90] sm:$0xff]  ;;  %v285_v5 = vld [vmem:[#allocation5 + $0x3b8] sm:$0xff] }
 0x135   :  { %v2592_v13 = vpop.f32.mrf.mxu1  ;;  %2844 = vmatpush1.bf16.msra.mxu0 %v4010_v0  ;;  %v3829_v0 = vcombine.high %v289_v59, %v293_v60  ;;  %v528_v11 = vld [vmem:[#allocation5 + $0xb50] sm:$0xff]  ;;  %v245_v51 = vld [vmem:[#allocation5 + $0x278] sm:$0xff] }
 0x136   :  { %2885 = vmatpush1.bf16.msra.mxu1 %v3756_v3  ;;  %v2552_v15 = vpop.f32.mrf.mxu0  ;;  %2845 = vmatprep.subr.bf16.mxu0 %v4003_v4  ;;  %v540_v3 = vld [vmem:[#allocation5 + $0xbb0] sm:$0xff]  ;;  %v281_v4 = vld [vmem:[#allocation5 + $0x398] sm:$0xff] }
 0x137   :  { %v2593_v18 = vpop.f32.mrf.mxu1  ;;  %2886 = vmatprep.subr.bf16.mxu1 %v3749_v6  ;;  %v4082_v6 = vcombine.low %v544_v57, %v548_v58  ;;  %v4075_v8 = vcombine.high %v536_v2, %v540_v3  ;;  %v3821_v10 = vcombine.high %v281_v4, %v285_v5  ;;  %v532_v12 = vld [vmem:[#allocation5 + $0xb70] sm:$0xff]  ;;  %v273_v13 = vld [vmem:[#allocation5 + $0x358] sm:$0xff]  ;;  %v4074_v15 = vcombine.low %v536_v2, %v540_v3 }
 0x138   :  { %v4066_v24 = vcombine.low %v528_v11, %v532_v12  ;;  %v492_v57 = vld [vmem:[#allocation5 + $0xa30] sm:$0xff]  ;;  %v233_v58 = vld [vmem:[#allocation5 + $0x218] sm:$0xff] }
 0x139   :  { %2846 = vmatpush1.bf16.msra.mxu0 %v4002_v14  ;;  %v277_v14 = vld [vmem:[#allocation5 + $0x378] sm:$0xff] }
 0x13a   :  { %2887 = vmatpush1.bf16.msra.mxu1 %v3748_v16  ;;  %2847 = vmatprep.subr.bf16.mxu0 %v3995_v17  ;;  %v3820_v16 = vcombine.low %v281_v4, %v285_v5  ;;  %v4067_v17 = vcombine.high %v528_v11, %v532_v12  ;;  %v3813_v18 = vcombine.high %v273_v13, %v277_v14  ;;  %v237_v59 = vld [vmem:[#allocation5 + $0x238] sm:$0xff] }
 0x13b   :  { %2888 = vmatprep.subr.bf16.mxu1 %v3741_v19  ;;  %v520_v19 = vld [vmem:[#allocation5 + $0xb10] sm:$0xff]  ;;  %v357_v2 = vld [vmem:[#allocation5 + $0x5f8] sm:$0xff] }
 0x13c   :  { %v4058_v33 = vcombine.low %v520_v19, %v524_v20  ;;  %v481_v3 = vld [vmem:[#allocation5 + $0x9d8] sm:$0xff] }
 0x13d   :  { %2848 = vmatpush1.bf16.msra.mxu0 %v3994_v26  ;;  %v3812_v26 = vcombine.low %v273_v13, %v277_v14  ;;  %v485_v4 = vld [vmem:[#allocation5 + $0x9f8] sm:$0xff] }
 0x13e   :  { %2889 = vmatpush1.bf16.msra.mxu1 %v3740_v28  ;;  %2849 = vmatprep.subr.bf16.mxu0 %v3987_v27  ;;  %v4059_v28 = vcombine.high %v520_v19, %v524_v20  ;;  %v3805_v27 = vcombine.high %v265_v21, %v269_v22  ;;  %v349_v11 = vld [vmem:[#allocation5 + $0x5b8] sm:$0xff] }
 0x13f   :  { %2890 = vmatprep.subr.bf16.mxu1 %v3733_v29  ;;  %v512_v29 = vld [vmem:[#allocation5 + $0xad0] sm:$0xff]  ;;  %v473_v12 = vld [vmem:[#allocation5 + $0x998] sm:$0xff] }
 0x140   :  { %v4050_v44 = vcombine.low %v512_v29, %v516_v30  ;;  %v477_v13 = vld [vmem:[#allocation5 + $0x9b8] sm:$0xff] }
 0x141   :  { %2850 = vmatpush1.bf16.msra.mxu0 %v3986_v34  ;;  %v3804_v34 = vcombine.low %v265_v21, %v269_v22  ;;  %v341_v19 = vld [vmem:[#allocation5 + $0x578] sm:$0xff] }
 0x142   :  { %2891 = vmatpush1.bf16.msra.mxu1 %v3732_v36  ;;  %2851 = vmatprep.subr.bf16.mxu0 %v3979_v37  ;;  %v4051_v36 = vcombine.high %v512_v29, %v516_v30  ;;  %v3797_v37 = vcombine.high %v257_v31, %v261_v32  ;;  %v465_v21 = vld [vmem:[#allocation5 + $0x958] sm:$0xff]  ;;  %v4012_v29 = vcombine.low %v473_v12, %v477_v13 }
 0x143   :  { %2892 = vmatprep.subr.bf16.mxu1 %v3725_v38  ;;  %v504_v38 = vld [vmem:[#allocation5 + $0xa90] sm:$0xff]  ;;  %v469_v22 = vld [vmem:[#allocation5 + $0x978] sm:$0xff] }
 0x144   :  { %v4042_v52 = vcombine.low %v504_v38, %v508_v39 }
 0x145   :  { %2852 = vmatpush1.bf16.msra.mxu0 %v3978_v45  ;;  %v3796_v45 = vcombine.low %v257_v31, %v261_v32  ;;  %v4005_v32 = vcombine.high %v465_v21, %v469_v22 }
 0x146   :  { %2893 = vmatpush1.bf16.msra.mxu1 %v3724_v46  ;;  %2853 = vmatprep.subr.bf16.mxu0 %v3971_v47  ;;  %v4043_v46 = vcombine.high %v504_v38, %v508_v39  ;;  %v3789_v47 = vcombine.high %v249_v41, %v253_v42 }
 0x147   :  { %2894 = vmatprep.subr.bf16.mxu1 %v3717_v48  ;;  %v496_v48 = vld [vmem:[#allocation5 + $0xa50] sm:$0xff] }
 0x148   :  { %v4034_v60 = vcombine.low %v496_v48, %v500_v49 }
 0x149   :  { %2854 = vmatpush1.bf16.msra.mxu0 %v3970_v53  ;;  %v3788_v53 = vcombine.low %v249_v41, %v253_v42  ;;  %v4004_v41 = vcombine.low %v465_v21, %v469_v22  ;;  %v409_v22 = vld [vmem:[#allocation5 + $0x798] sm:$0xff] }
 0x14a   :  { %2895 = vmatpush1.bf16.msra.mxu1 %v3716_v54  ;;  %2855 = vmatprep.subr.bf16.mxu0 %v3963_v55  ;;  %v4035_v54 = vcombine.high %v496_v48, %v500_v49  ;;  %v3781_v55 = vcombine.high %v241_v50, %v245_v51  ;;  %v449_v48 = vld [vmem:[#allocation5 + $0x8d8] sm:$0xff] }
 0x14b   :  { %2896 = vmatprep.subr.bf16.mxu1 %v3709_v56  ;;  %v488_v56 = vld [vmem:[#allocation5 + $0xa10] sm:$0xff] }
 0x14c   :  { %v4026_v5 = vcombine.low %v488_v56, %v492_v57 }
 0x14d   :  { %2856 = vmatpush1.bf16.msra.mxu0 %v3962_v61  ;;  %v3780_v61 = vcombine.low %v241_v50, %v245_v51 }
 0x14e   :  { %2897 = vmatpush1.bf16.msra.mxu1 %v3708_v62  ;;  %2857 = vmatprep.subr.bf16.mxu0 %v4083_v63  ;;  %v4027_v62 = vcombine.high %v488_v56, %v492_v57  ;;  %v3773_v63 = vcombine.high %v233_v58, %v237_v59 }
 0x14f   :  { %2898 = vmatprep.subr.bf16.mxu1 %v3829_v0  ;;  %v353_v0 = vld [vmem:[#allocation5 + $0x5d8] sm:$0xff] }
 0x150   :  { %v3892_v14 = vcombine.low %v353_v0, %v357_v2 }
 0x151   :  { %2858 = vmatpush2.bf16.msra.mxu0 %v4082_v6  ;;  %v3772_v6 = vcombine.low %v233_v58, %v237_v59 }
 0x152   :  { %2899 = vmatpush2.bf16.msra.mxu1 %v3828_v7  ;;  %2859 = vmatprep.subr.bf16.mxu0 %v4075_v8  ;;  %v3893_v7 = vcombine.high %v353_v0, %v357_v2  ;;  %v4021_v8 = vcombine.high %v481_v3, %v485_v4 }
 0x153   :  { %2900 = vmatprep.subr.bf16.mxu1 %v3821_v10  ;;  %v345_v10 = vld [vmem:[#allocation5 + $0x598] sm:$0xff] }
 0x155   :  { %2860 = vmatpush2.bf16.msra.mxu0 %v4074_v15  ;;  %v4020_v15 = vcombine.low %v481_v3, %v485_v4 }
 0x156   :  { %2901 = vmatpush2.bf16.msra.mxu1 %v3820_v16  ;;  %2861 = vmatprep.subr.bf16.mxu0 %v4067_v17  ;;  %v3885_v16 = vcombine.high %v345_v10, %v349_v11  ;;  %v4013_v17 = vcombine.high %v473_v12, %v477_v13 }
 0x157   :  { %2902 = vmatprep.subr.bf16.mxu1 %v3813_v18  ;;  %v337_v18 = vld [vmem:[#allocation5 + $0x558] sm:$0xff] }
 0x158   :  { %v3877_v30 = vcombine.high %v337_v18, %v341_v19  ;;  %v3876_v38 = vcombine.low %v337_v18, %v341_v19 }
 0x159   :  { %2862 = vmatpush2.bf16.msra.mxu0 %v4066_v24 }
 0x15a   :  { %2903 = vmatpush2.bf16.msra.mxu1 %v3812_v26  ;;  %2863 = vmatprep.subr.bf16.mxu0 %v4059_v28  ;;  %v3884_v28 = vcombine.low %v345_v10, %v349_v11 }
 0x15b   :  { %2904 = vmatprep.subr.bf16.mxu1 %v3805_v27 }
 0x15d   :  { %2864 = vmatpush2.bf16.msra.mxu0 %v4058_v33  ;;  %v329_v33 = vld [vmem:[#allocation5 + $0x518] sm:$0xff] }
 0x15e   :  { %2905 = vmatpush2.bf16.msra.mxu1 %v3804_v34  ;;  %2865 = vmatprep.subr.bf16.mxu0 %v4051_v36  ;;  %v333_v34 = vld [vmem:[#allocation5 + $0x538] sm:$0xff] }
 0x15f   :  { %2906 = vmatprep.subr.bf16.mxu1 %v3797_v37  ;;  %v457_v36 = vld [vmem:[#allocation5 + $0x918] sm:$0xff]  ;;  %v3869_v42 = vcombine.high %v329_v33, %v333_v34  ;;  %v3868_v49 = vcombine.low %v329_v33, %v333_v34 }
 0x160   :  { %v461_v37 = vld [vmem:[#allocation5 + $0x938] sm:$0xff] }
 0x161   :  { %2866 = vmatpush2.bf16.msra.mxu0 %v4050_v44 }
 0x162   :  { %2907 = vmatpush2.bf16.msra.mxu1 %v3796_v45  ;;  %2867 = vmatprep.subr.bf16.mxu0 %v4043_v46  ;;  %v3997_v45 = vcombine.high %v457_v36, %v461_v37  ;;  %v321_v46 = vld [vmem:[#allocation5 + $0x4d8] sm:$0xff] }
 0x163   :  { %2908 = vmatprep.subr.bf16.mxu1 %v3789_v47  ;;  %v325_v47 = vld [vmem:[#allocation5 + $0x4f8] sm:$0xff] }
 0x164   :  { %v3861_v50 = vcombine.high %v321_v46, %v325_v47  ;;  %v3860_v56 = vcombine.low %v321_v46, %v325_v47  ;;  %v397_v46 = vld [vmem:[#allocation5 + $0x738] sm:$0xff] }
 0x165   :  { %2868 = vmatpush2.bf16.msra.mxu0 %v4042_v52  ;;  %v313_v52 = vld [vmem:[#allocation5 + $0x498] sm:$0xff] }
 0x166   :  { %2909 = vmatpush2.bf16.msra.mxu1 %v3788_v53  ;;  %2869 = vmatprep.subr.bf16.mxu0 %v4035_v54  ;;  %v317_v53 = vld [vmem:[#allocation5 + $0x4b8] sm:$0xff] }
 0x167   :  { %2910 = vmatprep.subr.bf16.mxu1 %v3781_v55  ;;  %v441_v54 = vld [vmem:[#allocation5 + $0x898] sm:$0xff]  ;;  %v3853_v58 = vcombine.high %v313_v52, %v317_v53  ;;  %v3852_v0 = vcombine.low %v313_v52, %v317_v53 }
 0x168   :  { %v445_v55 = vld [vmem:[#allocation5 + $0x8b8] sm:$0xff] }
 0x169   :  { %2870 = vmatpush2.bf16.msra.mxu0 %v4034_v60  ;;  %v3981_v59 = vcombine.high %v441_v54, %v445_v55  ;;  %v305_v60 = vld [vmem:[#allocation5 + $0x458] sm:$0xff]  ;;  %v3980_v2 = vcombine.low %v441_v54, %v445_v55 }
 0x16a   :  { %2911 = vmatpush2.bf16.msra.mxu1 %v3780_v61  ;;  %2871 = vmatprep.subr.bf16.mxu0 %v4027_v62  ;;  %v309_v61 = vld [vmem:[#allocation5 + $0x478] sm:$0xff] }
 0x16b   :  { %2912 = vmatprep.subr.bf16.mxu1 %v3773_v63  ;;  %v433_v62 = vld [vmem:[#allocation5 + $0x858] sm:$0xff]  ;;  %v3845_v3 = vcombine.high %v305_v60, %v309_v61  ;;  %v3844_v10 = vcombine.low %v305_v60, %v309_v61 }
 0x16c   :  { %v437_v63 = vld [vmem:[#allocation5 + $0x878] sm:$0xff] }
 0x16d   :  { %2872 = vmatpush2.bf16.msra.mxu0 %v4026_v5  ;;  %v3973_v4 = vcombine.high %v433_v62, %v437_v63  ;;  %v297_v5 = vld [vmem:[#allocation5 + $0x418] sm:$0xff]  ;;  %v3972_v11 = vcombine.low %v433_v62, %v437_v63 }
 0x16e   :  { %2913 = vmatpush2.bf16.msra.mxu1 %v3772_v6  ;;  %2923 = vmatprep.subr.bf16.mxu0 %v3893_v7  ;;  %v301_v6 = vld [vmem:[#allocation5 + $0x438] sm:$0xff] }
 0x16f   :  { %2964 = vmatprep.subr.bf16.mxu1 %v4021_v8  ;;  %v425_v7 = vld [vmem:[#allocation5 + $0x818] sm:$0xff]  ;;  %v3837_v12 = vcombine.high %v297_v5, %v301_v6  ;;  %v3836_v18 = vcombine.low %v297_v5, %v301_v6 }
 0x170   :  { %v2629_v20 = vpop.f32.mrf.mxu0  ;;  %2874 = vmatmul.mubr.bf16.vlgmr.msra.gmra.mxu0 %v4507_v25  ;;  %v429_v8 = vld [vmem:[#allocation5 + $0x838] sm:$0xff] }
 0x171   :  { %v4527_v24 = vadd.f32 %v2629_v20, %v4519_v1  ;;  %v4529_v26 = vpop.f32.mrf.mxu1  ;;  %2915 = vmatmul.mubr.bf16.vlgmr.msra.gmra.mxu1 %v4495_v40  ;;  %2924 = vmatpush1.bf16.msra.mxu0 %v3892_v14  ;;  %v3965_v13 = vcombine.high %v425_v7, %v429_v8  ;;  %v417_v14 = vld [vmem:[#allocation5 + $0x7d8] sm:$0xff]  ;;  %v3964_v19 = vcombine.low %v425_v7, %v429_v8 }
 0x172   :  { %2965 = vmatpush1.bf16.msra.mxu1 %v4020_v15  ;;  %v4532_v27 = vpop.f32.mrf.mxu0  ;;  %2925 = vmatprep.subr.bf16.mxu0 %v3885_v16  ;;  %v421_v15 = vld [vmem:[#allocation5 + $0x7f8] sm:$0xff] }
 0x173   :  { %v4534_v31 = vpop.f32.mrf.mxu1  ;;  %2966 = vmatprep.subr.bf16.mxu1 %v4013_v17  ;;  %2955 = vmatprep.mubr.bf16.mxu0 %v4489_v35  ;;  %v453_v35 = vld [vmem:[#allocation5 + $0x8f8] sm:$0xff]  ;;  %v3957_v20 = vcombine.high %v417_v14, %v421_v15 }
 0x174   :  { %v2633_v1 = vpop.f32.mrf.mxu0  ;;  %2996 = vmatprep.mubr.bf16.mxu1 %v4503_v23  ;;  %v3996_v23 = vcombine.low %v457_v36, %v461_v37  ;;  %v3989_v51 = vcombine.high %v449_v48, %v453_v35  ;;  %v3988_v57 = vcombine.low %v449_v48, %v453_v35  ;;  %v545_v16 = vld [vmem:[#allocation5 + $0xbd8] sm:$0xff] }
 0x175   :  { %v2674_v40 = vpop.f32.mrf.mxu1  ;;  %2926 = vmatpush1.bf16.msra.mxu0 %v3884_v28  ;;  %v549_v17 = vld [vmem:[#allocation5 + $0xbf8] sm:$0xff] }
 0x176   :  { %2967 = vmatpush1.bf16.msra.mxu1 %v4012_v29  ;;  %v2634_v39 = vpop.f32.mrf.mxu0  ;;  %2927 = vmatprep.subr.bf16.mxu0 %v3877_v30  ;;  %v4085_v21 = vcombine.high %v545_v16, %v549_v17  ;;  %v413_v28 = vld [vmem:[#allocation5 + $0x7b8] sm:$0xff]  ;;  %v4084_v33 = vcombine.low %v545_v16, %v549_v17 }
 0x177   :  { %v2675_v44 = vpop.f32.mrf.mxu1  ;;  %2968 = vmatprep.subr.bf16.mxu1 %v4005_v32  ;;  %v537_v29 = vld [vmem:[#allocation5 + $0xb98] sm:$0xff]  ;;  %v3956_v32 = vcombine.low %v417_v14, %v421_v15  ;;  %v3949_v34 = vcombine.high %v409_v22, %v413_v28  ;;  %v3948_v39 = vcombine.low %v409_v22, %v413_v28 }
 0x178   :  { %v541_v30 = vld [vmem:[#allocation5 + $0xbb8] sm:$0xff] }
 0x179   :  { %2928 = vmatpush1.bf16.msra.mxu0 %v3876_v38  ;;  %v4077_v1 = vcombine.high %v537_v29, %v541_v30  ;;  %v401_v36 = vld [vmem:[#allocation5 + $0x758] sm:$0xff] }
 0x17a   :  { %2969 = vmatpush1.bf16.msra.mxu1 %v4004_v41  ;;  %2929 = vmatprep.subr.bf16.mxu0 %v3869_v42  ;;  %v405_v37 = vld [vmem:[#allocation5 + $0x778] sm:$0xff]  ;;  %v4076_v41 = vcombine.low %v537_v29, %v541_v30  ;;  %v2632_v30 = vadd.f32 %v4532_v27, %v4522_v9  ;;  %v4255_v27 = vld [vmem:[#allocation7 + $0xb0] sm:$0xff]  }
 0x17b   :  { %2970 = vmatprep.subr.bf16.mxu1 %v3997_v45  ;;  %v529_v40 = vld [vmem:[#allocation5 + $0xb58] sm:$0xff]  ;;  %v3941_v42 = vcombine.high %v401_v36, %v405_v37  ;;  %v3940_v35 = vcombine.low %v401_v36, %v405_v37 }
 0x17c   :  { %v533_v38 = vld [vmem:[#allocation5 + $0xb78] sm:$0xff]  ;;  %v3006_v36 = vpack.c.bf16 %v2632_v30, %v2632_v30 }
 0x17d   :  { %2930 = vmatpush1.bf16.msra.mxu0 %v3868_v49  ;;  %v4069_v44 = vcombine.high %v529_v40, %v533_v38  ;;  %v393_v45 = vld [vmem:[#allocation5 + $0x718] sm:$0xff]  ;;  %v4068_v49 = vcombine.low %v529_v40, %v533_v38  ;;  %v4254_v38 = vld [vmem:[#allocation7 + $0x30] sm:$0xff]  }
 0x17e   :  { %2971 = vmatpush1.bf16.msra.mxu1 %v3996_v23  ;;  %2931 = vmatprep.subr.bf16.mxu0 %v3861_v50  ;;  %v521_v47 = vld [vmem:[#allocation5 + $0xb18] sm:$0xff]  ;;  %v3933_v23 = vcombine.high %v393_v45, %v397_v46  ;;  %v3932_v55 = vcombine.low %v393_v45, %v397_v46 }
 0x17f   :  { %2972 = vmatprep.subr.bf16.mxu1 %v3989_v51  ;;  %v525_v48 = vld [vmem:[#allocation5 + $0xb38] sm:$0xff] }
 0x180   :  { %v4061_v50 = vcombine.high %v521_v47, %v525_v48  ;;  %v385_v51 = vld [vmem:[#allocation5 + $0x6d8] sm:$0xff] }
 0x181   :  { %2932 = vmatpush1.bf16.msra.mxu0 %v3860_v56  ;;  %v389_v52 = vld [vmem:[#allocation5 + $0x6f8] sm:$0xff]  ;;  %v4060_v56 = vcombine.low %v521_v47, %v525_v48  ;;  %v4258_v47 = vld [vmem:[#allocation7 + $0x28] sm:$0xff]  }
 0x182   :  { %2973 = vmatpush1.bf16.msra.mxu1 %v3988_v57  ;;  %2933 = vmatprep.subr.bf16.mxu0 %v3853_v58  ;;  %v513_v53 = vld [vmem:[#allocation5 + $0xad8] sm:$0xff]  ;;  %v3925_v57 = vcombine.high %v385_v51, %v389_v52  ;;  %v3924_v63 = vcombine.low %v385_v51, %v389_v52  ;;  %v4259_v48 = vld [vmem:[#allocation7 + $0xa8] sm:$0xff]   ;;  %v4263_v51 = vld [vmem:[#allocation7 + $0xa0] sm:$0xff]  }
 0x183   :  { %2974 = vmatprep.subr.bf16.mxu1 %v3981_v59  ;;  %v517_v54 = vld [vmem:[#allocation5 + $0xaf8] sm:$0xff] }
 0x184   :  { %v4053_v58 = vcombine.high %v513_v53, %v517_v54  ;;  %v377_v59 = vld [vmem:[#allocation5 + $0x698] sm:$0xff] }
 0x185   :  { %2934 = vmatpush1.bf16.msra.mxu0 %v3852_v0  ;;  %v381_v60 = vld [vmem:[#allocation5 + $0x6b8] sm:$0xff]  ;;  %v4052_v0 = vcombine.low %v513_v53, %v517_v54 }
 0x186   :  { %2975 = vmatpush1.bf16.msra.mxu1 %v3980_v2  ;;  %2935 = vmatprep.subr.bf16.mxu0 %v3845_v3  ;;  %v505_v61 = vld [vmem:[#allocation5 + $0xa98] sm:$0xff]  ;;  %v3917_v2 = vcombine.high %v377_v59, %v381_v60  ;;  %v3916_v8 = vcombine.low %v377_v59, %v381_v60  ;;  %v4271_v59 = vld [vmem:[#allocation7 + $0x90] sm:$0xff]   ;;  %v4272_v60 = vld [vmem:[#allocation7 + $0x48] sm:$0xff]  }
 0x187   :  { %2976 = vmatprep.subr.bf16.mxu1 %v3973_v4  ;;  %v509_v62 = vld [vmem:[#allocation5 + $0xab8] sm:$0xff] }
 0x188   :  { %v4045_v3 = vcombine.high %v505_v61, %v509_v62  ;;  %v369_v4 = vld [vmem:[#allocation5 + $0x658] sm:$0xff] }
 0x189   :  { %2936 = vmatpush1.bf16.msra.mxu0 %v3844_v10  ;;  %v373_v5 = vld [vmem:[#allocation5 + $0x678] sm:$0xff]  ;;  %v4044_v10 = vcombine.low %v505_v61, %v509_v62  ;;  %v4273_v61 = vld [vmem:[#allocation7 + $0xc8] sm:$0xff]  }
 0x18a   :  { %2977 = vmatpush1.bf16.msra.mxu1 %v3972_v11  ;;  %2937 = vmatprep.subr.bf16.mxu0 %v3837_v12  ;;  %v497_v6 = vld [vmem:[#allocation5 + $0xa58] sm:$0xff]  ;;  %v3909_v11 = vcombine.high %v369_v4, %v373_v5  ;;  %v3908_v17 = vcombine.low %v369_v4, %v373_v5  ;;  %v4274_v62 = vld [vmem:[#allocation7 + $0x8] sm:$0xff]   ;;  %v4278_v4 = vld [vmem:[#allocation7] sm:$0xff]  }
 0x18b   :  { %2978 = vmatprep.subr.bf16.mxu1 %v3965_v13  ;;  %v501_v7 = vld [vmem:[#allocation5 + $0xa78] sm:$0xff]  ;;  %v4279_v5 = vld [vmem:[#allocation7 + $0x80] sm:$0xff]  }
 0x18c   :  { %v4037_v12 = vcombine.high %v497_v6, %v501_v7  ;;  %v361_v13 = vld [vmem:[#allocation5 + $0x618] sm:$0xff] }
 0x18d   :  { %2938 = vmatpush1.bf16.msra.mxu0 %v3836_v18  ;;  %v365_v14 = vld [vmem:[#allocation5 + $0x638] sm:$0xff]  ;;  %v4036_v18 = vcombine.low %v497_v6, %v501_v7 }
 0x18e   :  { %2979 = vmatpush1.bf16.msra.mxu1 %v3964_v19  ;;  %2939 = vmatprep.subr.bf16.mxu0 %v3957_v20  ;;  %v489_v15 = vld [vmem:[#allocation5 + $0xa18] sm:$0xff]  ;;  %v3901_v19 = vcombine.high %v361_v13, %v365_v14 }
 0x18f   :  { %2980 = vmatprep.subr.bf16.mxu1 %v4085_v21  ;;  %v493_v16 = vld [vmem:[#allocation5 + $0xa38] sm:$0xff]  ;;  %v3900_v21 = vcombine.low %v361_v13, %v365_v14  ;;  %v4298_v14 = vld [vmem:[#allocation7 + $0x1f0] sm:$0xff]  }
 0x190   :  { %v4029_v20 = vcombine.high %v489_v15, %v493_v16  ;;  %v4028_v22 = vcombine.low %v489_v15, %v493_v16  ;;  %v4248_v28 = vld [vmem:[#allocation7 + $0x78] sm:$0xff]   ;;  %v4283_v15 = vld [vmem:[#allocation7 + $0x130] sm:$0xff]   ;;  %v4284_v16 = vld [vmem:[#allocation7 + $0x168] sm:$0xff]  }
 0x191   :  { %2940 = vmatpush2.bf16.msra.mxu0 %v3956_v32  ;;  %v4249_v29 = vld [vmem:[#allocation7 + $0xf8] sm:$0xff]  }
 0x192   :  { %2981 = vmatpush2.bf16.msra.mxu1 %v4084_v33  ;;  %2941 = vmatprep.subr.bf16.mxu0 %v3949_v34  ;;  %v4250_v32 = vld [vmem:[#allocation7 + $0x38] sm:$0xff]   ;;  %v4252_v34 = vld [vmem:[#allocation7 + $0x70] sm:$0xff]  }
 0x193   :  { %2982 = vmatprep.subr.bf16.mxu1 %v4077_v1  ;;  %v4251_v33 = vld [vmem:[#allocation7 + $0xb8] sm:$0xff]   ;;  %v4253_v1 = vld [vmem:[#allocation7 + $0xf0] sm:$0xff]  }
 0x194   :  { %v4264_v52 = vld [vmem:[#allocation7 + $0x58] sm:$0xff]  }
 0x195   :  { %2942 = vmatpush2.bf16.msra.mxu0 %v3948_v39  ;;  %v4256_v39 = vld [vmem:[#allocation7 + $0x68] sm:$0xff]   ;;  %v4265_v53 = vld [vmem:[#allocation7 + $0xd8] sm:$0xff]  }
 0x196   :  { %2983 = vmatpush2.bf16.msra.mxu1 %v4076_v41  ;;  %2943 = vmatprep.subr.bf16.mxu0 %v3941_v42  ;;  %v4266_v54 = vld [vmem:[#allocation7 + $0x18] sm:$0xff]  }
 0x197   :  { %2984 = vmatprep.subr.bf16.mxu1 %v4069_v44  ;;  %v4257_v44 = vld [vmem:[#allocation7 + $0xe8] sm:$0xff]   ;;  %v4280_v6 = vld [vmem:[#allocation7 + $0x178] sm:$0xff]  }
 0x198   :  { %v4304_v30 = vld [vmem:[#allocation7 + $0x1d8] sm:$0xff]  }
 0x199   :  { %2944 = vmatpush2.bf16.msra.mxu0 %v3940_v35  ;;  %v4260_v35 = vld [vmem:[#allocation7 + $0x60] sm:$0xff]  }
 0x19a   :  { %2985 = vmatpush2.bf16.msra.mxu1 %v4068_v49  ;;  %2945 = vmatprep.subr.bf16.mxu0 %v3933_v23 }
 0x19b   :  { %2986 = vmatprep.subr.bf16.mxu1 %v4061_v50  ;;  %v4261_v50 = vld [vmem:[#allocation7 + $0xe0] sm:$0xff]  }
 0x19d   :  { %2946 = vmatpush2.bf16.msra.mxu0 %v3932_v55  ;;  %v4267_v55 = vld [vmem:[#allocation7 + $0x98] sm:$0xff]  }
 0x19e   :  { %2987 = vmatpush2.bf16.msra.mxu1 %v4060_v56  ;;  %2947 = vmatprep.subr.bf16.mxu0 %v3925_v57  ;;  %v4268_v56 = vld [vmem:[#allocation7 + $0x50] sm:$0xff]  }
 0x19f   :  { %2988 = vmatprep.subr.bf16.mxu1 %v4053_v58  ;;  %v4269_v57 = vld [vmem:[#allocation7 + $0xd0] sm:$0xff]  }
 0x1a0   :  { %v4270_v58 = vld [vmem:[#allocation7 + $0x10] sm:$0xff]  }
 0x1a1   :  { %2948 = vmatpush2.bf16.msra.mxu0 %v3924_v63  ;;  %v4275_v63 = vld [vmem:[#allocation7 + $0x88] sm:$0xff]  }
 0x1a2   :  { %2989 = vmatpush2.bf16.msra.mxu1 %v4052_v0  ;;  %2949 = vmatprep.subr.bf16.mxu0 %v3917_v2  ;;  %v4276_v0 = vld [vmem:[#allocation7 + $0x40] sm:$0xff]  }
 0x1a3   :  { %2990 = vmatprep.subr.bf16.mxu1 %v4045_v3  ;;  %v4277_v3 = vld [vmem:[#allocation7 + $0xc0] sm:$0xff]  }
 0x1a5   :  { %2950 = vmatpush2.bf16.msra.mxu0 %v3916_v8  ;;  %v4296_v8 = vld [vmem:[#allocation7 + $0x1f8] sm:$0xff]  }
 0x1a6   :  { %2991 = vmatpush2.bf16.msra.mxu1 %v4044_v10  ;;  %2951 = vmatprep.subr.bf16.mxu0 %v3909_v11  ;;  %v4281_v10 = vld [vmem:[#allocation7 + $0x138] sm:$0xff]   ;;  %v3005_v11 = vpack.c.bf16 %v4527_v24, %v4527_v24  ;;  %v4286_v24 = vld [vmem:[#allocation7 + $0x160] sm:$0xff]  }
 0x1a7   :  { %2992 = vmatprep.subr.bf16.mxu1 %v4037_v12  ;;  %v4297_v12 = vld [vmem:[#allocation7 + $0x1b8] sm:$0xff]  }
 0x1a9   :  { %2952 = vmatpush2.bf16.msra.mxu0 %v3908_v17  ;;  %v4299_v17 = vld [vmem:[#allocation7 + $0x1b0] sm:$0xff]  }
 0x1aa   :  { %2993 = vmatpush2.bf16.msra.mxu1 %v4036_v18  ;;  %2953 = vmatprep.subr.bf16.mxu0 %v3901_v19  ;;  %v4300_v18 = vld [vmem:[#allocation7 + $0x1e8] sm:$0xff]  }
 0x1ab   :  { %2994 = vmatprep.subr.bf16.mxu1 %v4029_v20  ;;  %v4285_v19 = vld [vmem:[#allocation7 + $0x128] sm:$0xff]  }
 0x1ac   :  { %v4301_v20 = vld [vmem:[#allocation7 + $0x1a8] sm:$0xff]  }
 0x1ad   :  { %2954 = vmatpush2.bf16.msra.mxu0 %v3900_v21  ;;  %v4302_v21 = vld [vmem:[#allocation7 + $0x1e0] sm:$0xff]  }
 0x1ae   :  { %2995 = vmatpush2.bf16.msra.mxu1 %v4028_v22  ;;  %4150 = vmatprep.subr.bf16.mxu0 %v4248_v28  ;;  %v4287_v22 = vld [vmem:[#allocation7 + $0x120] sm:$0xff]   ;;  %v4288_v28 = vld [vmem:[#allocation7 + $0x158] sm:$0xff]  }
 0x1af   :  { %4172 = vmatprep.subr.bf16.mxu1 %v4249_v29  ;;  %v4303_v29 = vld [vmem:[#allocation7 + $0x1a0] sm:$0xff]  }
 0x1b0   :  { %v2711_v37 = vpop.f32.mrf.mxu0  ;;  %2956 = vmatmul.mubr.bf16.vlgmr.msra.gmra.mxu0 %v4497_v43 }
 0x1b1   :  { %v4541_v40 = vpop.f32.mrf.mxu1  ;;  %2997 = vmatmul.mubr.bf16.vlgmr.msra.gmra.mxu1 %v4507_v25  ;;  %4151 = vmatpush3.bf16.msra.mxu0 %v4250_v32  ;;  %v2712_v2 = vadd.f32 %v2711_v37, %v4529_v26  ;;  %v4282_v26 = vld [vmem:[#allocation7 + $0x170] sm:$0xff]   ;;  %v4289_v32 = vld [vmem:[#allocation7 + $0x118] sm:$0xff]   ;;  %v4292_v37 = vld [vmem:[#allocation7 + $0x148] sm:$0xff]  }
 0x1b2   :  { %3557 = vmatprep.mubr.bf16.mxu0 %v3006_v36  ;;  %4173 = vmatpush3.bf16.msra.mxu1 %v4251_v33  ;;  %v2713_v9 = vpop.f32.mrf.mxu0  ;;  %v4290_v33 = vld [vmem:[#allocation7 + $0x150] sm:$0xff]  }
 0x1b3   :  { %v2714_v41 = vadd.f32 %v2713_v9, %v4534_v31  ;;  %v2754_v42 = vpop.f32.mrf.mxu1  ;;  %4152 = vmatprep.subr.bf16.mxu0 %v4252_v34  ;;  %4174 = vmatprep.subr.bf16.mxu1 %v4253_v1  ;;  %v4262_v31 = vld [vmem:[#allocation7 + $0x20] sm:$0xff]   ;;  %v2753_v7 = vadd.f32 %v4541_v40, %v2712_v2  ;;  %v4305_v34 = vld [vmem:[#allocation7 + $0x198] sm:$0xff]   ;;  %v4306_v1 = vld [vmem:[#allocation7 + $0x1d0] sm:$0xff]  }
 0x1b4   :  { %v2715_v45 = vpop.f32.mrf.mxu0  ;;  %v4291_v36 = vld [vmem:[#allocation7 + $0x110] sm:$0xff]   ;;  %v4294_v9 = vld [vmem:[#allocation7 + $0x140] sm:$0xff]  }
 0x1b5   :  { %v2755_v46 = vadd.f32 %v2754_v42, %v2714_v41  ;;  %v2756_v43 = vpop.f32.mrf.mxu1  ;;  %4153 = vmatpush3.bf16.msra.mxu0 %v4254_v38  ;;  %v3007_v13 = vpack.c.bf16 %v2753_v7, %v2753_v7  ;;  %v4307_v40 = vld [vmem:[#allocation7 + $0x190] sm:$0xff]   ;;  %v4293_v38 = vld [vmem:[#allocation7 + $0x108] sm:$0xff]  }
 0x1b6   :  { %4175 = vmatpush3.bf16.msra.mxu1 %v4255_v27  ;;  %v2716_v25 = vpop.f32.mrf.mxu0  ;;  %4154 = vmatprep.subr.bf16.mxu0 %v4256_v39  ;;  %v4295_v27 = vld [vmem:[#allocation7 + $0x100] sm:$0xff]   ;;  %v4308_v42 = vld [vmem:[#allocation7 + $0x1c8] sm:$0xff]  }
 0x1b7   :  { %v3008_v49 = vpack.c.bf16 %v2755_v46, %v2755_v46  ;;  %v2757_v23 = vpop.f32.mrf.mxu1  ;;  %4176 = vmatprep.subr.bf16.mxu1 %v4257_v44  ;;  %v4309_v46 = vld [vmem:[#allocation7 + $0x188] sm:$0xff]  }
 0x1b9   :  { %4155 = vmatpush3.bf16.msra.mxu0 %v4258_v47  ;;  %3597 = vmatprep.mubr.bf16.mxu1 %v3008_v49  ;;  %v4311_v49 = vld [vmem:[#allocation7 + $0x180] sm:$0xff]  }
 0x1ba   :  { %4177 = vmatpush3.bf16.msra.mxu1 %v4259_v48  ;;  %4156 = vmatprep.subr.bf16.mxu0 %v4260_v35  ;;  %v4310_v48 = vld [vmem:[#allocation7 + $0x1c0] sm:$0xff]  }
 0x1bb   :  { %4178 = vmatprep.subr.bf16.mxu1 %v4261_v50 }
 0x1bd   :  { %4157 = vmatpush3.bf16.msra.mxu0 %v4262_v31 }
 0x1be   :  { %4179 = vmatpush3.bf16.msra.mxu1 %v4263_v51  ;;  %4158 = vmatprep.subr.bf16.mxu0 %v4264_v52 }
 0x1bf   :  { %4180 = vmatprep.subr.bf16.mxu1 %v4265_v53 }
 0x1c1   :  { %4159 = vmatpush3.bf16.msra.mxu0 %v4266_v54 }
 0x1c2   :  { %4181 = vmatpush3.bf16.msra.mxu1 %v4267_v55  ;;  %4160 = vmatprep.subr.bf16.mxu0 %v4268_v56 }
 0x1c3   :  { %4182 = vmatprep.subr.bf16.mxu1 %v4269_v57 }
 0x1c5   :  { %4161 = vmatpush3.bf16.msra.mxu0 %v4270_v58 }
 0x1c6   :  { %4183 = vmatpush3.bf16.msra.mxu1 %v4271_v59  ;;  %4162 = vmatprep.subr.bf16.mxu0 %v4272_v60 }
 0x1c7   :  { %4184 = vmatprep.subr.bf16.mxu1 %v4273_v61 }
 0x1c9   :  { %4163 = vmatpush3.bf16.msra.mxu0 %v4274_v62 }
 0x1ca   :  { %4185 = vmatpush3.bf16.msra.mxu1 %v4275_v63  ;;  %4164 = vmatprep.subr.bf16.mxu0 %v4276_v0 }
 0x1cb   :  { %4186 = vmatprep.subr.bf16.mxu1 %v4277_v3 }
 0x1cd   :  { %4165 = vmatpush3.bf16.msra.mxu0 %v4278_v4 }
 0x1ce   :  { %4187 = vmatpush3.bf16.msra.mxu1 %v4279_v5  ;;  %4194 = vmatprep.subr.bf16.mxu0 %v4280_v6 }
 0x1cf   :  { %4216 = vmatprep.subr.bf16.mxu1 %v4296_v8 }
 0x1d0   :  { %3558 = vmatmul.mubr.bf16.vlgmr.msra.gmra.mxu0 %v3005_v11 }
 0x1d1   :  { %3598 = vmatmul.mubr.bf16.vlgmr.msra.gmra.mxu1 %v3007_v13  ;;  %4195 = vmatpush3.bf16.msra.mxu0 %v4281_v10 }
 0x1d2   :  { %4196 = vmatprep.subr.bf16.mxu0 %v4282_v26  ;;  %4217 = vmatpush3.bf16.msra.mxu1 %v4297_v12 }
 0x1d3   :  { %4218 = vmatprep.subr.bf16.mxu1 %v4298_v14 }
 0x1d5   :  { %4197 = vmatpush3.bf16.msra.mxu0 %v4283_v15 }
 0x1d6   :  { %4198 = vmatprep.subr.bf16.mxu0 %v4284_v16  ;;  %4219 = vmatpush3.bf16.msra.mxu1 %v4299_v17 }
 0x1d7   :  { %4220 = vmatprep.subr.bf16.mxu1 %v4300_v18 }
 0x1d9   :  { %4199 = vmatpush3.bf16.msra.mxu0 %v4285_v19 }
 0x1da   :  { %4200 = vmatprep.subr.bf16.mxu0 %v4286_v24  ;;  %4221 = vmatpush3.bf16.msra.mxu1 %v4301_v20 }
 0x1db   :  { %4222 = vmatprep.subr.bf16.mxu1 %v4302_v21 }
 0x1dd   :  { %4201 = vmatpush3.bf16.msra.mxu0 %v4287_v22 }
 0x1de   :  { %4202 = vmatprep.subr.bf16.mxu0 %v4288_v28  ;;  %4223 = vmatpush3.bf16.msra.mxu1 %v4303_v29 }
 0x1df   :  { %4224 = vmatprep.subr.bf16.mxu1 %v4304_v30 }
 0x1e1   :  { %4203 = vmatpush3.bf16.msra.mxu0 %v4289_v32 }
 0x1e2   :  { %4204 = vmatprep.subr.bf16.mxu0 %v4290_v33  ;;  %4225 = vmatpush3.bf16.msra.mxu1 %v4305_v34 }
 0x1e3   :  { %4226 = vmatprep.subr.bf16.mxu1 %v4306_v1 }
 0x1e5   :  { %4205 = vmatpush3.bf16.msra.mxu0 %v4291_v36 }
 0x1e6   :  { %4206 = vmatprep.subr.bf16.mxu0 %v4292_v37  ;;  %4227 = vmatpush3.bf16.msra.mxu1 %v4307_v40 }
 0x1e7   :  { %4228 = vmatprep.subr.bf16.mxu1 %v4308_v42 }
 0x1e9   :  { %4207 = vmatpush3.bf16.msra.mxu0 %v4293_v38 }
 0x1ea   :  { %4208 = vmatprep.subr.bf16.mxu0 %v4294_v9  ;;  %4229 = vmatpush3.bf16.msra.mxu1 %v4309_v46 }
 0x1eb   :  { %4230 = vmatprep.subr.bf16.mxu1 %v4310_v48 }
 0x1ed   :  { %4209 = vmatpush3.bf16.msra.mxu0 %v4295_v27 }
 0x1ee   :  { %4231 = vmatpush3.bf16.msra.mxu1 %v4311_v49 }
 0x1f0   :  { %v2793_v39 = vpop.f32.mrf.mxu0 }
 0x1f1   :  { %v2834_v41 = vpop.f32.mrf.mxu1 }
 0x1f2   :  { %v2835_v44 = vadd.f32 %v2834_v41, %v2793_v39  ;;  %v2795_v45 = vpop.f32.mrf.mxu0 }
 0x1f3   :  { %v2836_v43 = vpop.f32.mrf.mxu1 }
 0x1f4   :  { %v2797_v47 = vpop.f32.mrf.mxu0  ;;  %v2837_v31 = vadd.f32 %v2836_v43, %v2795_v45 }
 0x1f5   :  { %v2838_v25 = vpop.f32.mrf.mxu1 }
 0x1f6   :  { %v2798_v35 = vpop.f32.mrf.mxu0 }
 0x1f7   :  { %v2839_v23 = vpop.f32.mrf.mxu1 }
 0x230   :  { %v2875_v50 = vpop.f32.mrf.mxu0 }
 0x231   :  { %v2916_v51 = vpop.f32.mrf.mxu1  ;;  %v2876_v52 = vadd.f32 %v2875_v50, %v2835_v44 }
 0x232   :  { %v2877_v53 = vpop.f32.mrf.mxu0 }
 0x233   :  { %v2878_v54 = vadd.f32 %v2877_v53, %v2837_v31  ;;  %v2918_v55 = vpop.f32.mrf.mxu1  ;;  %v3009_v59 = vpack.c.bf16 %v2876_v52, %v2876_v52 }
 0x234   :  { %v2879_v56 = vpop.f32.mrf.mxu0 }
 0x235   :  { %v3010_v57 = vpack.c.bf16 %v2878_v54, %v2878_v54  ;;  %v2920_v58 = vpop.f32.mrf.mxu1 }
 0x236   :  { %v2880_v60 = vpop.f32.mrf.mxu0 }
 0x237   :  { %v2921_v61 = vpop.f32.mrf.mxu1  ;;  %3637 = vmatprep.mubr.bf16.mxu0 %v3010_v57 }
 0x238   :  { %3638 = vmatmul.mubr.bf16.vlgmr.msra.gmra.mxu0 %v3009_v59 }
 0x270   :  { %v2957_v62 = vpop.f32.mrf.mxu0 }
 0x271   :  { %v2958_v63 = vadd.f32 %v2957_v62, %v2916_v51  ;;  %v2998_v0 = vpop.f32.mrf.mxu1 }
 0x272   :  { %v2959_v2 = vpop.f32.mrf.mxu0 }
 0x273   :  { %v2960_v3 = vadd.f32 %v2959_v2, %v2918_v55  ;;  %v3000_v4 = vpop.f32.mrf.mxu1  ;;  %v2999_v5 = vadd.f32 %v2998_v0, %v2958_v63 }
 0x274   :  { %v2961_v6 = vpop.f32.mrf.mxu0 }
 0x275   :  { %v3001_v7 = vadd.f32 %v3000_v4, %v2960_v3  ;;  %v3002_v8 = vpop.f32.mrf.mxu1  ;;  %v3011_v12 = vpack.c.bf16 %v2999_v5, %v2999_v5 }
 0x276   :  { %v2962_v10 = vpop.f32.mrf.mxu0 }
 0x277   :  { %v3012_v11 = vpack.c.bf16 %v3001_v7, %v3001_v7  ;;  %v3003_v26 = vpop.f32.mrf.mxu1 }
 0x279   :  { %3677 = vmatprep.mubr.bf16.mxu1 %v3012_v11 }
 0x27a   :  { %3678 = vmatmul.mubr.bf16.vlgmr.msra.gmra.mxu1 %v3011_v12 }
 0x290   :  { %v4166_v13 = vpop.f32.mrf.mxu0 }
 0x291   :  { %v4188_v14 = vpop.f32.mrf.mxu1 }
 0x292   :  { %v4167_v15 = vpop.f32.mrf.mxu0 }
 0x293   :  { %v4168_v16 = vadd.f32 %v4167_v15, %v4166_v13  ;;  %v4189_v17 = vpop.f32.mrf.mxu1 }
 0x294   :  { %v4190_v18 = vadd.f32 %v4189_v17, %v4188_v14  ;;  %v4169_v19 = vpop.f32.mrf.mxu0 }
 0x295   :  { %v4191_v24 = vpop.f32.mrf.mxu1 }
 0x296   :  { %v3600_v20 = vadd.f32 %v4190_v18, %v4168_v16  ;;  %v4170_v21 = vpop.f32.mrf.mxu0 }
 0x297   :  { %v4192_v22 = vpop.f32.mrf.mxu1 }
 0x2f8   :  { %v4210_v28 = vpop.f32.mrf.mxu0 }
 0x2fa   :  { %v4211_v29 = vpop.f32.mrf.mxu0 }
 0x2fb   :  { %v4212_v30 = vadd.f32 %v4211_v29, %v4210_v28 }
 0x2fc   :  { %v4213_v32 = vpop.f32.mrf.mxu0 }
 0x2fd   :  { %v3640_v33 = vadd.f32 %v4212_v30, %v3600_v20 }
 0x2fe   :  { %v4214_v34 = vpop.f32.mrf.mxu0 }
 0x33a   :  { %v4232_v1 = vpop.f32.mrf.mxu1 }
 0x33c   :  { %v4233_v36 = vpop.f32.mrf.mxu1 }
 0x33d   :  { %v4234_v37 = vadd.f32 %v4233_v36, %v4232_v1 }
 0x33e   :  { %v4235_v40 = vpop.f32.mrf.mxu1 }
 0x33f   :  { %v3680_v38 = vadd.f32 %v4234_v37, %v3640_v33 }
 0x340   :  { %v4236_v9 = vpop.f32.mrf.mxu1 }
 0x341   :  { %3685 = vst [vmem:[#allocation8] sm:$0x3] %v3680_v38 }
 0x342   :  { %4383 = shalt.err (!%p4380_p5)
}
 0x343   :  { %3695 = dma.vmem_to_hbm [thread:$0]  %s3693_s2, 32, %s4555_s3, [#allocation4]  }
 0x344   :  { %4396 = dma.done.wait [#allocation4], 32  }
 0x345   :  { %4397 = vsyncadd [#allocation4], 4294967264 }
 0x346   :  { %3699 = vsyncpa [#allocation3], 1 }
 0x347   :  { %3700 = vsyncpa [#allocation6], 1 }
 0x348   :  { %3701 = vsyncpa [#allocation4], 1 }

</bundles_post_ra>
